<compile_context>
chip_gen: v7x
topology: tpu7x:2x2x1
jax: 0.10.0
libtpu: 0.0.40
codegen_flags: <defaults>
</compile_context>

<pallas_src>
import functools

import jax
import jax.numpy as jnp
from jax.experimental import pallas as pl
from jax.experimental.pallas import tpu as pltpu

LRELU_SLOPE = 0.01   # nn.LeakyReLU() default
EPS = 1e-5           # nn.InstanceNorm2d default eps


def _round_up(v, m):
    return (v + m - 1) // m * m


# ----------------------------- fused UpBlock kernel -----------------------------

def _upblock_kernel(x_ref, wA_ref, wB_ref, wC_ref, mask_ref, o_ref,
                    phA_ref, phB_ref, *, OC, sv, wp, D, inv_count):
    """Whole UpBlock forward for one batch element in the subpixel (phase)
    domain.  Row index of every 16-row operand/result is (a*2+b)*OC + oc where
    (a, b) is the output-pixel parity (phase) of the 2x-upsampled image.

    x_ref    : (Cin, Lx)    bf16  flat zero-padded input image (row stride wp)
    wA_ref   : (9, 16, Cin) bf16  deconv weights, one stacked LHS per tap offset
    wB_ref   : (9, 16, 16)  bf16  conv1 weights as phase-domain block matrices
    wC_ref   : (9, 16, 16)  bf16  conv2 weights as phase-domain block matrices
    mask_ref : (1, sv)      f32   1.0 on valid (non junk-column) flat positions
    o_ref    : (16, Lout)   f32   final phase-domain output
    phA_ref, phB_ref : (16, Lpp) bf16 VMEM scratch (chained phase buffers)
    """
    M = 4 * OC
    Lpp = phA_ref.shape[1]
    mask = mask_ref[...]                                      # (1, sv)

    def rep4(v):                                              # (OC, 1) -> (M, 1)
        return jnp.concatenate([v, v, v, v], axis=0)

    def conv_in_lrelu(src_ref, w_ref, base, residual=None):
        # 9 tap offsets; each is one bf16 MXU matmul on a shifted lane window,
        # accumulated in f32.
        acc = None
        for r in range(3):
            for c in range(3):
                off = base + r * wp + c
                win = src_ref[:, off:off + sv]                # (K, sv) bf16
                part = jnp.dot(w_ref[r * 3 + c], win,
                               preferred_element_type=jnp.float32)   # (M, sv)
                acc = part if acc is None else acc + part
        # InstanceNorm over the full 2Hx2W image = all 4 phases' valid pixels.
        ssum = acc[0:OC] + acc[OC:2 * OC] + acc[2 * OC:3 * OC] + acc[3 * OC:4 * OC]
        mean = jnp.sum(ssum * mask, axis=-1, keepdims=True) * inv_count     # (OC,1)
        diff = (acc - rep4(mean)) * mask                      # junk columns -> 0
        d2 = diff * diff
        vsum = d2[0:OC] + d2[OC:2 * OC] + d2[2 * OC:3 * OC] + d2[3 * OC:4 * OC]
        var = jnp.sum(vsum, axis=-1, keepdims=True) * inv_count
        y = diff * rep4(jax.lax.rsqrt(var + EPS))
        if residual is not None:
            y = y + residual
        return jnp.where(y >= 0, y, LRELU_SLOPE * y)

    def store_phase_buffer(dst_ref, y):
        # Zero borders / tail so the next stage's shifted windows read correct
        # zero padding, then drop the valid block at the lane-aligned offset D.
        dst_ref[:, :D] = jnp.zeros((M, D), jnp.bfloat16)
        dst_ref[:, D + sv:] = jnp.zeros((M, Lpp - D - sv), jnp.bfloat16)
        dst_ref[:, D:D + sv] = y.astype(jnp.bfloat16)

    # --- stage A: ConvTranspose2d(4, 2, 1) (subpixel decomposition) + IN + LReLU
    yA = conv_in_lrelu(x_ref, wA_ref, 0)                      # (M, sv) f32
    store_phase_buffer(phA_ref, yA)

    # --- stage B: BasicBlock.conv1 (3x3, pad 1) in phase domain + IN + LReLU
    yB = conv_in_lrelu(phA_ref, wB_ref, D - wp - 1)
    store_phase_buffer(phB_ref, yB)

    # --- stage C: BasicBlock.conv2 + IN + identity residual (= yA) + LReLU
    yC = conv_in_lrelu(phB_ref, wC_ref, D - wp - 1, residual=yA)

    o_ref[:, :sv] = yC
    tail = o_ref.shape[1] - sv
    if tail:
        o_ref[:, sv:] = jnp.zeros((M, tail), jnp.float32)


# --------------------------------- host glue ------------------------------------

def _flatten_padded_bf16(x, wp, L):
    """Zero-pad spatially by 1, flatten rows with stride wp, pad flat axis to L."""
    N, C, H, W = x.shape
    xp = jnp.pad(x, ((0, 0), (0, 0), (1, 1), (1, wp - W - 1)))
    xf = xp.reshape(N, C, (H + 2) * wp)
    if L > xf.shape[-1]:
        xf = jnp.pad(xf, ((0, 0), (0, 0), (0, L - xf.shape[-1])))
    return xf.astype(jnp.bfloat16)


def _valid_mask(H, W, wp):
    row = (jnp.arange(wp) < W).astype(jnp.float32)
    return jnp.tile(row, (H,)).reshape(1, H * wp)


def _pack_deconv(wt, OC, Cin):
    """ConvTranspose2d(4,2,1) weights -> (9, 4*OC, Cin), one LHS per tap offset.

    Output phase (a,b) of the 2x-upsampled image is a 2x2-tap stride-1 conv of
    the 1-padded input; tap (dy,dx) reads padded offset (a+dy, b+dx) with kernel
    entry wt[:, :, 3-a-2dy, 3-b-2dx].  Offsets are shared across phases, so each
    of the 9 (r,c) offsets gets a stacked (4*OC, Cin) LHS with zero rows where a
    phase does not use that offset."""
    mats = []
    for r in range(3):
        for c in range(3):
            rows = []
            for a in range(2):
                for b in range(2):
                    dy, dx = r - a, c - b
                    if 0 <= dy <= 1 and 0 <= dx <= 1:
                        m = wt[:, :, 3 - a - 2 * dy, 3 - b - 2 * dx].T   # (OC, Cin)
                    else:
                        m = jnp.zeros((OC, Cin), wt.dtype)
                    rows.append(m)
            mats.append(jnp.concatenate(rows, axis=0))
    return jnp.stack(mats).astype(jnp.bfloat16)


def _pack_conv3(w, OC):
    """3x3/pad-1 conv on the 2x-upsampled image -> phase-domain block matrices.

    For output phase (ao,bo) and source phase (ai,bi), the 3x3 tap (dy,dx) falls
    on phase-grid offset (di,dj) with dy = 2*di + ai + 1 - ao (cols analogous);
    invalid taps get zero blocks.  Returns (9, 4*OC, 4*OC)."""
    mats = []
    for di in (-1, 0, 1):
        for dj in (-1, 0, 1):
            out_rows = []
            for ao in range(2):
                for bo in range(2):
                    in_cols = []
                    for ai in range(2):
                        for bi in range(2):
                            dy = 2 * di + ai + 1 - ao
                            dx = 2 * dj + bi + 1 - bo
                            if 0 <= dy <= 2 and 0 <= dx <= 2:
                                blk = w[:, :, dy, dx]            # (OC_out, OC_in)
                            else:
                                blk = jnp.zeros((OC, OC), w.dtype)
                            in_cols.append(blk)
                    out_rows.append(jnp.concatenate(in_cols, axis=1))
            mats.append(jnp.concatenate(out_rows, axis=0))
    return jnp.stack(mats).astype(jnp.bfloat16)


def up_block_forward_pallas(x, params):
    N, Cin, H, W = x.shape
    wt, w1, w2 = params["wt"], params["w1"], params["w2"]
    OC = wt.shape[1]
    M = 4 * OC

    wp = W + 2                                   # flat row stride (1-padded rows)
    sv = H * wp                                  # flat window length
    Lx = _round_up(sv + 2 * wp + 2, 128)         # stage-A input buffer length
    D = _round_up(wp + 1, 128)                   # lane-aligned valid-data start
    Lpp = _round_up(D + sv + wp + 1, 128)        # chained phase-buffer length
    Lout = _round_up(sv, 128)

    x_flat = _flatten_padded_bf16(x, wp, Lx)
    mask = _valid_mask(H, W, wp)
    wA = _pack_deconv(wt, OC, Cin)
    wB = _pack_conv3(w1, OC)
    wC = _pack_conv3(w2, OC)

    kernel = functools.partial(_upblock_kernel, OC=OC, sv=sv, wp=wp, D=D,
                               inv_count=1.0 / (4 * H * W))

    out = pl.pallas_call(
        kernel,
        out_shape=jax.ShapeDtypeStruct((N, M, Lout), jnp.float32),
        grid=(N,),
        in_specs=[
            pl.BlockSpec((None, Cin, Lx), lambda n: (n, 0, 0)),
            pl.BlockSpec((9, M, Cin), lambda n: (0, 0, 0)),
            pl.BlockSpec((9, M, M), lambda n: (0, 0, 0)),
            pl.BlockSpec((9, M, M), lambda n: (0, 0, 0)),
            pl.BlockSpec((1, sv), lambda n: (0, 0)),
        ],
        out_specs=pl.BlockSpec((None, M, Lout), lambda n: (n, 0, 0)),
        scratch_shapes=[pltpu.VMEM((M, Lpp), jnp.bfloat16),
                        pltpu.VMEM((M, Lpp), jnp.bfloat16)],
        compiler_params=pltpu.CompilerParams(
            dimension_semantics=("parallel",),
            vmem_limit_bytes=32 * 1024 * 1024),
    )(x_flat, wA, wB, wC, mask)

    # Single XLA pass: drop junk columns, interleave the 4 phases -> NCHW.
    y = out[:, :, :sv].reshape(N, 2, 2, OC, H, wp)[..., :W]
    return y.transpose(0, 3, 4, 1, 5, 2).reshape(N, OC, 2 * H, 2 * W)


# ---------------------------------- reference ------------------------------------

def _inorm_lrelu_ref(y, residual=None):
    mean = jnp.mean(y, axis=(2, 3), keepdims=True)
    var = jnp.mean(jnp.square(y - mean), axis=(2, 3), keepdims=True)
    z = (y - mean) * jax.lax.rsqrt(var + EPS)
    if residual is not None:
        z = z + residual
    return jnp.where(z >= 0, z, LRELU_SLOPE * z)


def up_block_forward_ref(x, params):
    """Pure-XLA reference matching the PyTorch module (bf16 conv operands with
    f32 accumulation so it mirrors the kernel's MXU precision)."""
    dn = ("NCHW", "OIHW", "NCHW")
    bf16, f32 = jnp.bfloat16, jnp.float32
    wt, bt = params["wt"], params["bt"]
    w1, b1 = params["w1"], params["b1"]
    w2, b2 = params["w2"], params["b2"]

    # ConvTranspose2d(4,2,1) == lhs-dilated correlation with flipped/swapped kernel
    wtf = jnp.flip(wt, axis=(2, 3)).transpose(1, 0, 2, 3)
    y = jax.lax.conv_general_dilated(
        x.astype(bf16), wtf.astype(bf16), window_strides=(1, 1),
        padding=[(2, 2), (2, 2)], lhs_dilation=(2, 2),
        dimension_numbers=dn, preferred_element_type=f32)
    y = _inorm_lrelu_ref(y + bt[None, :, None, None])

    identity = y
    z = jax.lax.conv_general_dilated(
        y.astype(bf16), w1.astype(bf16), (1, 1), [(1, 1), (1, 1)],
        dimension_numbers=dn, preferred_element_type=f32)
    z = _inorm_lrelu_ref(z + b1[None, :, None, None])
    z = jax.lax.conv_general_dilated(
        z.astype(bf16), w2.astype(bf16), (1, 1), [(1, 1), (1, 1)],
        dimension_numbers=dn, preferred_element_type=f32)
    z = _inorm_lrelu_ref(z + b2[None, :, None, None], residual=identity)
    return z


def init_params(key, in_channels, out_channels):
    ks = jax.random.split(key, 6)
    scale = 0.1
    return {
        # ConvTranspose2d weight layout: (in_channels, out_channels, 4, 4)
        "wt": scale * jax.random.normal(ks[0], (in_channels, out_channels, 4, 4), jnp.float32),
        "bt": scale * jax.random.normal(ks[1], (out_channels,), jnp.float32),
        "w1": scale * jax.random.normal(ks[2], (out_channels, out_channels, 3, 3), jnp.float32),
        "b1": scale * jax.random.normal(ks[3], (out_channels,), jnp.float32),
        "w2": scale * jax.random.normal(ks[4], (out_channels, out_channels, 3, 3), jnp.float32),
        "b2": scale * jax.random.normal(ks[5], (out_channels,), jnp.float32),
    }


def _run_case(key, N, Cin, OC, H, W, tol=5e-3):
    kx, kp = jax.random.split(key)
    x = jax.random.normal(kx, (N, Cin, H, W), jnp.float32)
    params = init_params(kp, Cin, OC)

    out = jax.block_until_ready(jax.jit(up_block_forward_pallas)(x, params))
    ref = jax.block_until_ready(jax.jit(up_block_forward_ref)(x, params))

    assert out.shape == (N, OC, 2 * H, 2 * W), out.shape
    assert bool(jnp.all(jnp.isfinite(out)))
    err = float(jnp.max(jnp.abs(out - ref)))
    assert err < tol, f"Pallas result mismatch vs reference (max abs err {err})"


if __name__ == "__main__":
    key = jax.random.PRNGKey(0)
    k1, k2 = jax.random.split(key)

    # Main config: batch=2, in_channels=8 -> out_channels=4, 16x16 -> 32x32.
    _run_case(k1, N=2, Cin=8, OC=4, H=16, W=16)
    # Non-square / non-multiple-of-8 spatial dims, N=1: exercises mask/padding.
    _run_case(k2, N=1, Cin=6, OC=4, H=10, W=6)

    print("KERNEL_OK")
</pallas_src>

<mosaic_0001>
module attributes {stable_mosaic.version = 11 : i64} {
  func.func @_upblock_kernel(%arg0: i32, %arg1: memref<1x8x384xbf16, #tpu.memory_space<vmem>>, %arg2: memref<9x16x8xbf16, #tpu.memory_space<vmem>>, %arg3: memref<9x16x16xbf16, #tpu.memory_space<vmem>>, %arg4: memref<9x16x16xbf16, #tpu.memory_space<vmem>>, %arg5: memref<1x288xf32, #tpu.memory_space<vmem>>, %arg6: memref<1x16x384xf32, #tpu.memory_space<vmem>>, %arg7: memref<16x512xbf16, #tpu.memory_space<vmem>>, %arg8: memref<16x512xbf16, #tpu.memory_space<vmem>>) attributes {dimension_semantics = [#tpu.dimension_semantics<parallel>], iteration_bounds = array<i64: 2>, scalar_prefetch = 0 : i64, scratch_operands = 2 : i64, tpu.core_type = #tpu.core_type<tc>, window_params = [{transform_indices = @transform_0, window_bounds = array<i64: 1, 8, 384>}, {pipeline_mode = #tpu.pipeline_mode<synchronous>, transform_indices = @transform_1, window_bounds = array<i64: 9, 16, 8>}, {pipeline_mode = #tpu.pipeline_mode<synchronous>, transform_indices = @transform_2, window_bounds = array<i64: 9, 16, 16>}, {pipeline_mode = #tpu.pipeline_mode<synchronous>, transform_indices = @transform_3, window_bounds = array<i64: 9, 16, 16>}, {pipeline_mode = #tpu.pipeline_mode<synchronous>, transform_indices = @transform_4, window_bounds = array<i64: 1, 288>}, {transform_indices = @transform_5, window_bounds = array<i64: 1, 16, 384>}]} {
    %c0 = arith.constant 0 : index
    %c0_0 = arith.constant 0 : index
    %0 = vector.load %arg5[%c0, %c0_0] : memref<1x288xf32, #tpu.memory_space<vmem>>, vector<1x288xf32>
    %c0_1 = arith.constant 0 : index
    %c0_2 = arith.constant 0 : index
    %c0_3 = arith.constant 0 : index
    %1 = vector.load %arg1[%c0_1, %c0_2, %c0_3] : memref<1x8x384xbf16, #tpu.memory_space<vmem>>, vector<1x8x288xbf16>
    %2 = vector.shape_cast %1 : vector<1x8x288xbf16> to vector<8x288xbf16>
    %c0_4 = arith.constant 0 : index
    %c0_5 = arith.constant 0 : index
    %c0_6 = arith.constant 0 : index
    %3 = vector.load %arg2[%c0_4, %c0_5, %c0_6] : memref<9x16x8xbf16, #tpu.memory_space<vmem>>, vector<1x16x8xbf16>
    %4 = vector.shape_cast %3 : vector<1x16x8xbf16> to vector<16x8xbf16>
    %cst = arith.constant dense<0.000000e+00> : vector<16x288xf32>
    %5 = tpu.matmul %4, %2, %cst {dimension_numbers = #tpu.dot_dimension_numbers<[1], [0], [0], [1], [0, 0, 1, 1], [], []>} : vector<16x8xbf16>, vector<8x288xbf16>, vector<16x288xf32> -> vector<16x288xf32>
    %c0_7 = arith.constant 0 : index
    %c0_8 = arith.constant 0 : index
    %c1 = arith.constant 1 : index
    %6 = vector.load %arg1[%c0_7, %c0_8, %c1] : memref<1x8x384xbf16, #tpu.memory_space<vmem>>, vector<1x8x288xbf16>
    %7 = vector.shape_cast %6 : vector<1x8x288xbf16> to vector<8x288xbf16>
    %c1_9 = arith.constant 1 : index
    %c0_10 = arith.constant 0 : index
    %c0_11 = arith.constant 0 : index
    %8 = vector.load %arg2[%c1_9, %c0_10, %c0_11] : memref<9x16x8xbf16, #tpu.memory_space<vmem>>, vector<1x16x8xbf16>
    %9 = vector.shape_cast %8 : vector<1x16x8xbf16> to vector<16x8xbf16>
    %cst_12 = arith.constant dense<0.000000e+00> : vector<16x288xf32>
    %10 = tpu.matmul %9, %7, %cst_12 {dimension_numbers = #tpu.dot_dimension_numbers<[1], [0], [0], [1], [0, 0, 1, 1], [], []>} : vector<16x8xbf16>, vector<8x288xbf16>, vector<16x288xf32> -> vector<16x288xf32>
    %11 = arith.addf %5, %10 : vector<16x288xf32>
    %c0_13 = arith.constant 0 : index
    %c0_14 = arith.constant 0 : index
    %c2 = arith.constant 2 : index
    %12 = vector.load %arg1[%c0_13, %c0_14, %c2] : memref<1x8x384xbf16, #tpu.memory_space<vmem>>, vector<1x8x288xbf16>
    %13 = vector.shape_cast %12 : vector<1x8x288xbf16> to vector<8x288xbf16>
    %c2_15 = arith.constant 2 : index
    %c0_16 = arith.constant 0 : index
    %c0_17 = arith.constant 0 : index
    %14 = vector.load %arg2[%c2_15, %c0_16, %c0_17] : memref<9x16x8xbf16, #tpu.memory_space<vmem>>, vector<1x16x8xbf16>
    %15 = vector.shape_cast %14 : vector<1x16x8xbf16> to vector<16x8xbf16>
    %cst_18 = arith.constant dense<0.000000e+00> : vector<16x288xf32>
    %16 = tpu.matmul %15, %13, %cst_18 {dimension_numbers = #tpu.dot_dimension_numbers<[1], [0], [0], [1], [0, 0, 1, 1], [], []>} : vector<16x8xbf16>, vector<8x288xbf16>, vector<16x288xf32> -> vector<16x288xf32>
    %17 = arith.addf %11, %16 : vector<16x288xf32>
    %c0_19 = arith.constant 0 : index
    %c0_20 = arith.constant 0 : index
    %c18 = arith.constant 18 : index
    %18 = vector.load %arg1[%c0_19, %c0_20, %c18] : memref<1x8x384xbf16, #tpu.memory_space<vmem>>, vector<1x8x288xbf16>
    %19 = vector.shape_cast %18 : vector<1x8x288xbf16> to vector<8x288xbf16>
    %c3 = arith.constant 3 : index
    %c0_21 = arith.constant 0 : index
    %c0_22 = arith.constant 0 : index
    %20 = vector.load %arg2[%c3, %c0_21, %c0_22] : memref<9x16x8xbf16, #tpu.memory_space<vmem>>, vector<1x16x8xbf16>
    %21 = vector.shape_cast %20 : vector<1x16x8xbf16> to vector<16x8xbf16>
    %cst_23 = arith.constant dense<0.000000e+00> : vector<16x288xf32>
    %22 = tpu.matmul %21, %19, %cst_23 {dimension_numbers = #tpu.dot_dimension_numbers<[1], [0], [0], [1], [0, 0, 1, 1], [], []>} : vector<16x8xbf16>, vector<8x288xbf16>, vector<16x288xf32> -> vector<16x288xf32>
    %23 = arith.addf %17, %22 : vector<16x288xf32>
    %c0_24 = arith.constant 0 : index
    %c0_25 = arith.constant 0 : index
    %c19 = arith.constant 19 : index
    %24 = vector.load %arg1[%c0_24, %c0_25, %c19] : memref<1x8x384xbf16, #tpu.memory_space<vmem>>, vector<1x8x288xbf16>
    %25 = vector.shape_cast %24 : vector<1x8x288xbf16> to vector<8x288xbf16>
    %c4 = arith.constant 4 : index
    %c0_26 = arith.constant 0 : index
    %c0_27 = arith.constant 0 : index
    %26 = vector.load %arg2[%c4, %c0_26, %c0_27] : memref<9x16x8xbf16, #tpu.memory_space<vmem>>, vector<1x16x8xbf16>
    %27 = vector.shape_cast %26 : vector<1x16x8xbf16> to vector<16x8xbf16>
    %cst_28 = arith.constant dense<0.000000e+00> : vector<16x288xf32>
    %28 = tpu.matmul %27, %25, %cst_28 {dimension_numbers = #tpu.dot_dimension_numbers<[1], [0], [0], [1], [0, 0, 1, 1], [], []>} : vector<16x8xbf16>, vector<8x288xbf16>, vector<16x288xf32> -> vector<16x288xf32>
    %29 = arith.addf %23, %28 : vector<16x288xf32>
    %c0_29 = arith.constant 0 : index
    %c0_30 = arith.constant 0 : index
    %c20 = arith.constant 20 : index
    %30 = vector.load %arg1[%c0_29, %c0_30, %c20] : memref<1x8x384xbf16, #tpu.memory_space<vmem>>, vector<1x8x288xbf16>
    %31 = vector.shape_cast %30 : vector<1x8x288xbf16> to vector<8x288xbf16>
    %c5 = arith.constant 5 : index
    %c0_31 = arith.constant 0 : index
    %c0_32 = arith.constant 0 : index
    %32 = vector.load %arg2[%c5, %c0_31, %c0_32] : memref<9x16x8xbf16, #tpu.memory_space<vmem>>, vector<1x16x8xbf16>
    %33 = vector.shape_cast %32 : vector<1x16x8xbf16> to vector<16x8xbf16>
    %cst_33 = arith.constant dense<0.000000e+00> : vector<16x288xf32>
    %34 = tpu.matmul %33, %31, %cst_33 {dimension_numbers = #tpu.dot_dimension_numbers<[1], [0], [0], [1], [0, 0, 1, 1], [], []>} : vector<16x8xbf16>, vector<8x288xbf16>, vector<16x288xf32> -> vector<16x288xf32>
    %35 = arith.addf %29, %34 : vector<16x288xf32>
    %c0_34 = arith.constant 0 : index
    %c0_35 = arith.constant 0 : index
    %c36 = arith.constant 36 : index
    %36 = vector.load %arg1[%c0_34, %c0_35, %c36] : memref<1x8x384xbf16, #tpu.memory_space<vmem>>, vector<1x8x288xbf16>
    %37 = vector.shape_cast %36 : vector<1x8x288xbf16> to vector<8x288xbf16>
    %c6 = arith.constant 6 : index
    %c0_36 = arith.constant 0 : index
    %c0_37 = arith.constant 0 : index
    %38 = vector.load %arg2[%c6, %c0_36, %c0_37] : memref<9x16x8xbf16, #tpu.memory_space<vmem>>, vector<1x16x8xbf16>
    %39 = vector.shape_cast %38 : vector<1x16x8xbf16> to vector<16x8xbf16>
    %cst_38 = arith.constant dense<0.000000e+00> : vector<16x288xf32>
    %40 = tpu.matmul %39, %37, %cst_38 {dimension_numbers = #tpu.dot_dimension_numbers<[1], [0], [0], [1], [0, 0, 1, 1], [], []>} : vector<16x8xbf16>, vector<8x288xbf16>, vector<16x288xf32> -> vector<16x288xf32>
    %41 = arith.addf %35, %40 : vector<16x288xf32>
    %c0_39 = arith.constant 0 : index
    %c0_40 = arith.constant 0 : index
    %c37 = arith.constant 37 : index
    %42 = vector.load %arg1[%c0_39, %c0_40, %c37] : memref<1x8x384xbf16, #tpu.memory_space<vmem>>, vector<1x8x288xbf16>
    %43 = vector.shape_cast %42 : vector<1x8x288xbf16> to vector<8x288xbf16>
    %c7 = arith.constant 7 : index
    %c0_41 = arith.constant 0 : index
    %c0_42 = arith.constant 0 : index
    %44 = vector.load %arg2[%c7, %c0_41, %c0_42] : memref<9x16x8xbf16, #tpu.memory_space<vmem>>, vector<1x16x8xbf16>
    %45 = vector.shape_cast %44 : vector<1x16x8xbf16> to vector<16x8xbf16>
    %cst_43 = arith.constant dense<0.000000e+00> : vector<16x288xf32>
    %46 = tpu.matmul %45, %43, %cst_43 {dimension_numbers = #tpu.dot_dimension_numbers<[1], [0], [0], [1], [0, 0, 1, 1], [], []>} : vector<16x8xbf16>, vector<8x288xbf16>, vector<16x288xf32> -> vector<16x288xf32>
    %47 = arith.addf %41, %46 : vector<16x288xf32>
    %c0_44 = arith.constant 0 : index
    %c0_45 = arith.constant 0 : index
    %c38 = arith.constant 38 : index
    %48 = vector.load %arg1[%c0_44, %c0_45, %c38] : memref<1x8x384xbf16, #tpu.memory_space<vmem>>, vector<1x8x288xbf16>
    %49 = vector.shape_cast %48 : vector<1x8x288xbf16> to vector<8x288xbf16>
    %c8 = arith.constant 8 : index
    %c0_46 = arith.constant 0 : index
    %c0_47 = arith.constant 0 : index
    %50 = vector.load %arg2[%c8, %c0_46, %c0_47] : memref<9x16x8xbf16, #tpu.memory_space<vmem>>, vector<1x16x8xbf16>
    %51 = vector.shape_cast %50 : vector<1x16x8xbf16> to vector<16x8xbf16>
    %cst_48 = arith.constant dense<0.000000e+00> : vector<16x288xf32>
    %52 = tpu.matmul %51, %49, %cst_48 {dimension_numbers = #tpu.dot_dimension_numbers<[1], [0], [0], [1], [0, 0, 1, 1], [], []>} : vector<16x8xbf16>, vector<8x288xbf16>, vector<16x288xf32> -> vector<16x288xf32>
    %53 = arith.addf %47, %52 : vector<16x288xf32>
    %54 = vector.extract_strided_slice %53 {offsets = [0, 0], sizes = [4, 288], strides = [1, 1]} : vector<16x288xf32> to vector<4x288xf32>
    %55 = vector.extract_strided_slice %53 {offsets = [4, 0], sizes = [4, 288], strides = [1, 1]} : vector<16x288xf32> to vector<4x288xf32>
    %56 = arith.addf %54, %55 : vector<4x288xf32>
    %57 = vector.extract_strided_slice %53 {offsets = [8, 0], sizes = [4, 288], strides = [1, 1]} : vector<16x288xf32> to vector<4x288xf32>
    %58 = arith.addf %56, %57 : vector<4x288xf32>
    %59 = vector.extract_strided_slice %53 {offsets = [12, 0], sizes = [4, 288], strides = [1, 1]} : vector<16x288xf32> to vector<4x288xf32>
    %60 = arith.addf %58, %59 : vector<4x288xf32>
    %61 = vector.broadcast %0 : vector<1x288xf32> to vector<4x288xf32>
    %62 = arith.mulf %60, %61 : vector<4x288xf32>
    %cst_49 = arith.constant dense<0.000000e+00> : vector<4xf32>
    %63 = vector.multi_reduction <add>, %62, %cst_49 [1] : vector<4x288xf32> to vector<4xf32>
    %64 = vector.shape_cast %63 : vector<4xf32> to vector<4x1xf32>
    %cst_50 = arith.constant 9.765625E-4 : f32
    %65 = vector.broadcast %cst_50 : f32 to vector<4x1xf32>
    %66 = arith.mulf %64, %65 : vector<4x1xf32>
    %67 = tpu.concatenate %66, %66, %66, %66 in 0 : vector<4x1xf32>, vector<4x1xf32>, vector<4x1xf32>, vector<4x1xf32> -> vector<16x1xf32>
    %68 = vector.broadcast %67 : vector<16x1xf32> to vector<16x288xf32>
    %69 = arith.subf %53, %68 : vector<16x288xf32>
    %70 = vector.broadcast %0 : vector<1x288xf32> to vector<16x288xf32>
    %71 = arith.mulf %69, %70 : vector<16x288xf32>
    %72 = arith.mulf %71, %71 : vector<16x288xf32>
    %73 = vector.extract_strided_slice %72 {offsets = [0, 0], sizes = [4, 288], strides = [1, 1]} : vector<16x288xf32> to vector<4x288xf32>
    %74 = vector.extract_strided_slice %72 {offsets = [4, 0], sizes = [4, 288], strides = [1, 1]} : vector<16x288xf32> to vector<4x288xf32>
    %75 = arith.addf %73, %74 : vector<4x288xf32>
    %76 = vector.extract_strided_slice %72 {offsets = [8, 0], sizes = [4, 288], strides = [1, 1]} : vector<16x288xf32> to vector<4x288xf32>
    %77 = arith.addf %75, %76 : vector<4x288xf32>
    %78 = vector.extract_strided_slice %72 {offsets = [12, 0], sizes = [4, 288], strides = [1, 1]} : vector<16x288xf32> to vector<4x288xf32>
    %79 = arith.addf %77, %78 : vector<4x288xf32>
    %cst_51 = arith.constant dense<0.000000e+00> : vector<4xf32>
    %80 = vector.multi_reduction <add>, %79, %cst_51 [1] : vector<4x288xf32> to vector<4xf32>
    %81 = vector.shape_cast %80 : vector<4xf32> to vector<4x1xf32>
    %cst_52 = arith.constant 9.765625E-4 : f32
    %82 = vector.broadcast %cst_52 : f32 to vector<4x1xf32>
    %83 = arith.mulf %81, %82 : vector<4x1xf32>
    %cst_53 = arith.constant 9.99999974E-6 : f32
    %84 = vector.broadcast %cst_53 : f32 to vector<4x1xf32>
    %85 = arith.addf %83, %84 : vector<4x1xf32>
    %86 = math.rsqrt %85 : vector<4x1xf32>
    %87 = tpu.concatenate %86, %86, %86, %86 in 0 : vector<4x1xf32>, vector<4x1xf32>, vector<4x1xf32>, vector<4x1xf32> -> vector<16x1xf32>
    %88 = vector.broadcast %87 : vector<16x1xf32> to vector<16x288xf32>
    %89 = arith.mulf %71, %88 : vector<16x288xf32>
    %cst_54 = arith.constant 0.000000e+00 : f32
    %90 = vector.broadcast %cst_54 : f32 to vector<16x288xf32>
    %91 = arith.cmpf oge, %89, %90 : vector<16x288xf32>
    %cst_55 = arith.constant 0.00999999977 : f32
    %92 = vector.broadcast %cst_55 : f32 to vector<16x288xf32>
    %93 = arith.mulf %92, %89 : vector<16x288xf32>
    %94 = arith.select %91, %89, %93 : vector<16x288xi1>, vector<16x288xf32>
    %cst_56 = arith.constant 0.000000e+00 : bf16
    %95 = vector.broadcast %cst_56 : bf16 to vector<16x128xbf16>
    %c0_57 = arith.constant 0 : index
    %c0_58 = arith.constant 0 : index
    %96 = vector.load %arg7[%c0_57, %c0_58] : memref<16x512xbf16, #tpu.memory_space<vmem>>, vector<16x128xbf16>
    tpu.vector_store %arg7[%c0_57, %c0_58], %95 {strides = array<i32>} : memref<16x512xbf16, #tpu.memory_space<vmem>>, vector<16x128xbf16>,
    %cst_59 = arith.constant 0.000000e+00 : bf16
    %97 = vector.broadcast %cst_59 : bf16 to vector<16x96xbf16>
    %c0_60 = arith.constant 0 : index
    %c416 = arith.constant 416 : index
    %98 = vector.load %arg7[%c0_60, %c416] : memref<16x512xbf16, #tpu.memory_space<vmem>>, vector<16x96xbf16>
    tpu.vector_store %arg7[%c0_60, %c416], %97 {strides = array<i32>} : memref<16x512xbf16, #tpu.memory_space<vmem>>, vector<16x96xbf16>,
    %99 = arith.truncf %94 : vector<16x288xf32> to vector<16x288xbf16>
    %c0_61 = arith.constant 0 : index
    %c128 = arith.constant 128 : index
    %100 = vector.load %arg7[%c0_61, %c128] : memref<16x512xbf16, #tpu.memory_space<vmem>>, vector<16x288xbf16>
    tpu.vector_store %arg7[%c0_61, %c128], %99 {strides = array<i32>} : memref<16x512xbf16, #tpu.memory_space<vmem>>, vector<16x288xbf16>,
    %c0_62 = arith.constant 0 : index
    %c109 = arith.constant 109 : index
    %101 = vector.load %arg7[%c0_62, %c109] : memref<16x512xbf16, #tpu.memory_space<vmem>>, vector<16x288xbf16>
    %c0_63 = arith.constant 0 : index
    %c0_64 = arith.constant 0 : index
    %c0_65 = arith.constant 0 : index
    %102 = vector.load %arg3[%c0_63, %c0_64, %c0_65] : memref<9x16x16xbf16, #tpu.memory_space<vmem>>, vector<1x16x16xbf16>
    %103 = vector.shape_cast %102 : vector<1x16x16xbf16> to vector<16x16xbf16>
    %cst_66 = arith.constant dense<0.000000e+00> : vector<16x288xf32>
    %104 = tpu.matmul %103, %101, %cst_66 {dimension_numbers = #tpu.dot_dimension_numbers<[1], [0], [0], [1], [0, 0, 1, 1], [], []>} : vector<16x16xbf16>, vector<16x288xbf16>, vector<16x288xf32> -> vector<16x288xf32>
    %c0_67 = arith.constant 0 : index
    %c110 = arith.constant 110 : index
    %105 = vector.load %arg7[%c0_67, %c110] : memref<16x512xbf16, #tpu.memory_space<vmem>>, vector<16x288xbf16>
    %c1_68 = arith.constant 1 : index
    %c0_69 = arith.constant 0 : index
    %c0_70 = arith.constant 0 : index
    %106 = vector.load %arg3[%c1_68, %c0_69, %c0_70] : memref<9x16x16xbf16, #tpu.memory_space<vmem>>, vector<1x16x16xbf16>
    %107 = vector.shape_cast %106 : vector<1x16x16xbf16> to vector<16x16xbf16>
    %cst_71 = arith.constant dense<0.000000e+00> : vector<16x288xf32>
    %108 = tpu.matmul %107, %105, %cst_71 {dimension_numbers = #tpu.dot_dimension_numbers<[1], [0], [0], [1], [0, 0, 1, 1], [], []>} : vector<16x16xbf16>, vector<16x288xbf16>, vector<16x288xf32> -> vector<16x288xf32>
    %109 = arith.addf %104, %108 : vector<16x288xf32>
    %c0_72 = arith.constant 0 : index
    %c111 = arith.constant 111 : index
    %110 = vector.load %arg7[%c0_72, %c111] : memref<16x512xbf16, #tpu.memory_space<vmem>>, vector<16x288xbf16>
    %c2_73 = arith.constant 2 : index
    %c0_74 = arith.constant 0 : index
    %c0_75 = arith.constant 0 : index
    %111 = vector.load %arg3[%c2_73, %c0_74, %c0_75] : memref<9x16x16xbf16, #tpu.memory_space<vmem>>, vector<1x16x16xbf16>
    %112 = vector.shape_cast %111 : vector<1x16x16xbf16> to vector<16x16xbf16>
    %cst_76 = arith.constant dense<0.000000e+00> : vector<16x288xf32>
    %113 = tpu.matmul %112, %110, %cst_76 {dimension_numbers = #tpu.dot_dimension_numbers<[1], [0], [0], [1], [0, 0, 1, 1], [], []>} : vector<16x16xbf16>, vector<16x288xbf16>, vector<16x288xf32> -> vector<16x288xf32>
    %114 = arith.addf %109, %113 : vector<16x288xf32>
    %c0_77 = arith.constant 0 : index
    %c127 = arith.constant 127 : index
    %115 = vector.load %arg7[%c0_77, %c127] : memref<16x512xbf16, #tpu.memory_space<vmem>>, vector<16x288xbf16>
    %c3_78 = arith.constant 3 : index
    %c0_79 = arith.constant 0 : index
    %c0_80 = arith.constant 0 : index
    %116 = vector.load %arg3[%c3_78, %c0_79, %c0_80] : memref<9x16x16xbf16, #tpu.memory_space<vmem>>, vector<1x16x16xbf16>
    %117 = vector.shape_cast %116 : vector<1x16x16xbf16> to vector<16x16xbf16>
    %cst_81 = arith.constant dense<0.000000e+00> : vector<16x288xf32>
    %118 = tpu.matmul %117, %115, %cst_81 {dimension_numbers = #tpu.dot_dimension_numbers<[1], [0], [0], [1], [0, 0, 1, 1], [], []>} : vector<16x16xbf16>, vector<16x288xbf16>, vector<16x288xf32> -> vector<16x288xf32>
    %119 = arith.addf %114, %118 : vector<16x288xf32>
    %c0_82 = arith.constant 0 : index
    %c128_83 = arith.constant 128 : index
    %120 = vector.load %arg7[%c0_82, %c128_83] : memref<16x512xbf16, #tpu.memory_space<vmem>>, vector<16x288xbf16>
    %c4_84 = arith.constant 4 : index
    %c0_85 = arith.constant 0 : index
    %c0_86 = arith.constant 0 : index
    %121 = vector.load %arg3[%c4_84, %c0_85, %c0_86] : memref<9x16x16xbf16, #tpu.memory_space<vmem>>, vector<1x16x16xbf16>
    %122 = vector.shape_cast %121 : vector<1x16x16xbf16> to vector<16x16xbf16>
    %cst_87 = arith.constant dense<0.000000e+00> : vector<16x288xf32>
    %123 = tpu.matmul %122, %120, %cst_87 {dimension_numbers = #tpu.dot_dimension_numbers<[1], [0], [0], [1], [0, 0, 1, 1], [], []>} : vector<16x16xbf16>, vector<16x288xbf16>, vector<16x288xf32> -> vector<16x288xf32>
    %124 = arith.addf %119, %123 : vector<16x288xf32>
    %c0_88 = arith.constant 0 : index
    %c129 = arith.constant 129 : index
    %125 = vector.load %arg7[%c0_88, %c129] : memref<16x512xbf16, #tpu.memory_space<vmem>>, vector<16x288xbf16>
    %c5_89 = arith.constant 5 : index
    %c0_90 = arith.constant 0 : index
    %c0_91 = arith.constant 0 : index
    %126 = vector.load %arg3[%c5_89, %c0_90, %c0_91] : memref<9x16x16xbf16, #tpu.memory_space<vmem>>, vector<1x16x16xbf16>
    %127 = vector.shape_cast %126 : vector<1x16x16xbf16> to vector<16x16xbf16>
    %cst_92 = arith.constant dense<0.000000e+00> : vector<16x288xf32>
    %128 = tpu.matmul %127, %125, %cst_92 {dimension_numbers = #tpu.dot_dimension_numbers<[1], [0], [0], [1], [0, 0, 1, 1], [], []>} : vector<16x16xbf16>, vector<16x288xbf16>, vector<16x288xf32> -> vector<16x288xf32>
    %129 = arith.addf %124, %128 : vector<16x288xf32>
    %c0_93 = arith.constant 0 : index
    %c145 = arith.constant 145 : index
    %130 = vector.load %arg7[%c0_93, %c145] : memref<16x512xbf16, #tpu.memory_space<vmem>>, vector<16x288xbf16>
    %c6_94 = arith.constant 6 : index
    %c0_95 = arith.constant 0 : index
    %c0_96 = arith.constant 0 : index
    %131 = vector.load %arg3[%c6_94, %c0_95, %c0_96] : memref<9x16x16xbf16, #tpu.memory_space<vmem>>, vector<1x16x16xbf16>
    %132 = vector.shape_cast %131 : vector<1x16x16xbf16> to vector<16x16xbf16>
    %cst_97 = arith.constant dense<0.000000e+00> : vector<16x288xf32>
    %133 = tpu.matmul %132, %130, %cst_97 {dimension_numbers = #tpu.dot_dimension_numbers<[1], [0], [0], [1], [0, 0, 1, 1], [], []>} : vector<16x16xbf16>, vector<16x288xbf16>, vector<16x288xf32> -> vector<16x288xf32>
    %134 = arith.addf %129, %133 : vector<16x288xf32>
    %c0_98 = arith.constant 0 : index
    %c146 = arith.constant 146 : index
    %135 = vector.load %arg7[%c0_98, %c146] : memref<16x512xbf16, #tpu.memory_space<vmem>>, vector<16x288xbf16>
    %c7_99 = arith.constant 7 : index
    %c0_100 = arith.constant 0 : index
    %c0_101 = arith.constant 0 : index
    %136 = vector.load %arg3[%c7_99, %c0_100, %c0_101] : memref<9x16x16xbf16, #tpu.memory_space<vmem>>, vector<1x16x16xbf16>
    %137 = vector.shape_cast %136 : vector<1x16x16xbf16> to vector<16x16xbf16>
    %cst_102 = arith.constant dense<0.000000e+00> : vector<16x288xf32>
    %138 = tpu.matmul %137, %135, %cst_102 {dimension_numbers = #tpu.dot_dimension_numbers<[1], [0], [0], [1], [0, 0, 1, 1], [], []>} : vector<16x16xbf16>, vector<16x288xbf16>, vector<16x288xf32> -> vector<16x288xf32>
    %139 = arith.addf %134, %138 : vector<16x288xf32>
    %c0_103 = arith.constant 0 : index
    %c147 = arith.constant 147 : index
    %140 = vector.load %arg7[%c0_103, %c147] : memref<16x512xbf16, #tpu.memory_space<vmem>>, vector<16x288xbf16>
    %c8_104 = arith.constant 8 : index
    %c0_105 = arith.constant 0 : index
    %c0_106 = arith.constant 0 : index
    %141 = vector.load %arg3[%c8_104, %c0_105, %c0_106] : memref<9x16x16xbf16, #tpu.memory_space<vmem>>, vector<1x16x16xbf16>
    %142 = vector.shape_cast %141 : vector<1x16x16xbf16> to vector<16x16xbf16>
    %cst_107 = arith.constant dense<0.000000e+00> : vector<16x288xf32>
    %143 = tpu.matmul %142, %140, %cst_107 {dimension_numbers = #tpu.dot_dimension_numbers<[1], [0], [0], [1], [0, 0, 1, 1], [], []>} : vector<16x16xbf16>, vector<16x288xbf16>, vector<16x288xf32> -> vector<16x288xf32>
    %144 = arith.addf %139, %143 : vector<16x288xf32>
    %145 = vector.extract_strided_slice %144 {offsets = [0, 0], sizes = [4, 288], strides = [1, 1]} : vector<16x288xf32> to vector<4x288xf32>
    %146 = vector.extract_strided_slice %144 {offsets = [4, 0], sizes = [4, 288], strides = [1, 1]} : vector<16x288xf32> to vector<4x288xf32>
    %147 = arith.addf %145, %146 : vector<4x288xf32>
    %148 = vector.extract_strided_slice %144 {offsets = [8, 0], sizes = [4, 288], strides = [1, 1]} : vector<16x288xf32> to vector<4x288xf32>
    %149 = arith.addf %147, %148 : vector<4x288xf32>
    %150 = vector.extract_strided_slice %144 {offsets = [12, 0], sizes = [4, 288], strides = [1, 1]} : vector<16x288xf32> to vector<4x288xf32>
    %151 = arith.addf %149, %150 : vector<4x288xf32>
    %152 = vector.broadcast %0 : vector<1x288xf32> to vector<4x288xf32>
    %153 = arith.mulf %151, %152 : vector<4x288xf32>
    %cst_108 = arith.constant dense<0.000000e+00> : vector<4xf32>
    %154 = vector.multi_reduction <add>, %153, %cst_108 [1] : vector<4x288xf32> to vector<4xf32>
    %155 = vector.shape_cast %154 : vector<4xf32> to vector<4x1xf32>
    %cst_109 = arith.constant 9.765625E-4 : f32
    %156 = vector.broadcast %cst_109 : f32 to vector<4x1xf32>
    %157 = arith.mulf %155, %156 : vector<4x1xf32>
    %158 = tpu.concatenate %157, %157, %157, %157 in 0 : vector<4x1xf32>, vector<4x1xf32>, vector<4x1xf32>, vector<4x1xf32> -> vector<16x1xf32>
    %159 = vector.broadcast %158 : vector<16x1xf32> to vector<16x288xf32>
    %160 = arith.subf %144, %159 : vector<16x288xf32>
    %161 = vector.broadcast %0 : vector<1x288xf32> to vector<16x288xf32>
    %162 = arith.mulf %160, %161 : vector<16x288xf32>
    %163 = arith.mulf %162, %162 : vector<16x288xf32>
    %164 = vector.extract_strided_slice %163 {offsets = [0, 0], sizes = [4, 288], strides = [1, 1]} : vector<16x288xf32> to vector<4x288xf32>
    %165 = vector.extract_strided_slice %163 {offsets = [4, 0], sizes = [4, 288], strides = [1, 1]} : vector<16x288xf32> to vector<4x288xf32>
    %166 = arith.addf %164, %165 : vector<4x288xf32>
    %167 = vector.extract_strided_slice %163 {offsets = [8, 0], sizes = [4, 288], strides = [1, 1]} : vector<16x288xf32> to vector<4x288xf32>
    %168 = arith.addf %166, %167 : vector<4x288xf32>
    %169 = vector.extract_strided_slice %163 {offsets = [12, 0], sizes = [4, 288], strides = [1, 1]} : vector<16x288xf32> to vector<4x288xf32>
    %170 = arith.addf %168, %169 : vector<4x288xf32>
    %cst_110 = arith.constant dense<0.000000e+00> : vector<4xf32>
    %171 = vector.multi_reduction <add>, %170, %cst_110 [1] : vector<4x288xf32> to vector<4xf32>
    %172 = vector.shape_cast %171 : vector<4xf32> to vector<4x1xf32>
    %cst_111 = arith.constant 9.765625E-4 : f32
    %173 = vector.broadcast %cst_111 : f32 to vector<4x1xf32>
    %174 = arith.mulf %172, %173 : vector<4x1xf32>
    %cst_112 = arith.constant 9.99999974E-6 : f32
    %175 = vector.broadcast %cst_112 : f32 to vector<4x1xf32>
    %176 = arith.addf %174, %175 : vector<4x1xf32>
    %177 = math.rsqrt %176 : vector<4x1xf32>
    %178 = tpu.concatenate %177, %177, %177, %177 in 0 : vector<4x1xf32>, vector<4x1xf32>, vector<4x1xf32>, vector<4x1xf32> -> vector<16x1xf32>
    %179 = vector.broadcast %178 : vector<16x1xf32> to vector<16x288xf32>
    %180 = arith.mulf %162, %179 : vector<16x288xf32>
    %cst_113 = arith.constant 0.000000e+00 : f32
    %181 = vector.broadcast %cst_113 : f32 to vector<16x288xf32>
    %182 = arith.cmpf oge, %180, %181 : vector<16x288xf32>
    %cst_114 = arith.constant 0.00999999977 : f32
    %183 = vector.broadcast %cst_114 : f32 to vector<16x288xf32>
    %184 = arith.mulf %183, %180 : vector<16x288xf32>
    %185 = arith.select %182, %180, %184 : vector<16x288xi1>, vector<16x288xf32>
    %cst_115 = arith.constant 0.000000e+00 : bf16
    %186 = vector.broadcast %cst_115 : bf16 to vector<16x128xbf16>
    %c0_116 = arith.constant 0 : index
    %c0_117 = arith.constant 0 : index
    %187 = vector.load %arg8[%c0_116, %c0_117] : memref<16x512xbf16, #tpu.memory_space<vmem>>, vector<16x128xbf16>
    tpu.vector_store %arg8[%c0_116, %c0_117], %186 {strides = array<i32>} : memref<16x512xbf16, #tpu.memory_space<vmem>>, vector<16x128xbf16>,
    %cst_118 = arith.constant 0.000000e+00 : bf16
    %188 = vector.broadcast %cst_118 : bf16 to vector<16x96xbf16>
    %c0_119 = arith.constant 0 : index
    %c416_120 = arith.constant 416 : index
    %189 = vector.load %arg8[%c0_119, %c416_120] : memref<16x512xbf16, #tpu.memory_space<vmem>>, vector<16x96xbf16>
    tpu.vector_store %arg8[%c0_119, %c416_120], %188 {strides = array<i32>} : memref<16x512xbf16, #tpu.memory_space<vmem>>, vector<16x96xbf16>,
    %190 = arith.truncf %185 : vector<16x288xf32> to vector<16x288xbf16>
    %c0_121 = arith.constant 0 : index
    %c128_122 = arith.constant 128 : index
    %191 = vector.load %arg8[%c0_121, %c128_122] : memref<16x512xbf16, #tpu.memory_space<vmem>>, vector<16x288xbf16>
    tpu.vector_store %arg8[%c0_121, %c128_122], %190 {strides = array<i32>} : memref<16x512xbf16, #tpu.memory_space<vmem>>, vector<16x288xbf16>,
    %c0_123 = arith.constant 0 : index
    %c109_124 = arith.constant 109 : index
    %192 = vector.load %arg8[%c0_123, %c109_124] : memref<16x512xbf16, #tpu.memory_space<vmem>>, vector<16x288xbf16>
    %c0_125 = arith.constant 0 : index
    %c0_126 = arith.constant 0 : index
    %c0_127 = arith.constant 0 : index
    %193 = vector.load %arg4[%c0_125, %c0_126, %c0_127] : memref<9x16x16xbf16, #tpu.memory_space<vmem>>, vector<1x16x16xbf16>
    %194 = vector.shape_cast %193 : vector<1x16x16xbf16> to vector<16x16xbf16>
    %cst_128 = arith.constant dense<0.000000e+00> : vector<16x288xf32>
    %195 = tpu.matmul %194, %192, %cst_128 {dimension_numbers = #tpu.dot_dimension_numbers<[1], [0], [0], [1], [0, 0, 1, 1], [], []>} : vector<16x16xbf16>, vector<16x288xbf16>, vector<16x288xf32> -> vector<16x288xf32>
    %c0_129 = arith.constant 0 : index
    %c110_130 = arith.constant 110 : index
    %196 = vector.load %arg8[%c0_129, %c110_130] : memref<16x512xbf16, #tpu.memory_space<vmem>>, vector<16x288xbf16>
    %c1_131 = arith.constant 1 : index
    %c0_132 = arith.constant 0 : index
    %c0_133 = arith.constant 0 : index
    %197 = vector.load %arg4[%c1_131, %c0_132, %c0_133] : memref<9x16x16xbf16, #tpu.memory_space<vmem>>, vector<1x16x16xbf16>
    %198 = vector.shape_cast %197 : vector<1x16x16xbf16> to vector<16x16xbf16>
    %cst_134 = arith.constant dense<0.000000e+00> : vector<16x288xf32>
    %199 = tpu.matmul %198, %196, %cst_134 {dimension_numbers = #tpu.dot_dimension_numbers<[1], [0], [0], [1], [0, 0, 1, 1], [], []>} : vector<16x16xbf16>, vector<16x288xbf16>, vector<16x288xf32> -> vector<16x288xf32>
    %200 = arith.addf %195, %199 : vector<16x288xf32>
    %c0_135 = arith.constant 0 : index
    %c111_136 = arith.constant 111 : index
    %201 = vector.load %arg8[%c0_135, %c111_136] : memref<16x512xbf16, #tpu.memory_space<vmem>>, vector<16x288xbf16>
    %c2_137 = arith.constant 2 : index
    %c0_138 = arith.constant 0 : index
    %c0_139 = arith.constant 0 : index
    %202 = vector.load %arg4[%c2_137, %c0_138, %c0_139] : memref<9x16x16xbf16, #tpu.memory_space<vmem>>, vector<1x16x16xbf16>
    %203 = vector.shape_cast %202 : vector<1x16x16xbf16> to vector<16x16xbf16>
    %cst_140 = arith.constant dense<0.000000e+00> : vector<16x288xf32>
    %204 = tpu.matmul %203, %201, %cst_140 {dimension_numbers = #tpu.dot_dimension_numbers<[1], [0], [0], [1], [0, 0, 1, 1], [], []>} : vector<16x16xbf16>, vector<16x288xbf16>, vector<16x288xf32> -> vector<16x288xf32>
    %205 = arith.addf %200, %204 : vector<16x288xf32>
    %c0_141 = arith.constant 0 : index
    %c127_142 = arith.constant 127 : index
    %206 = vector.load %arg8[%c0_141, %c127_142] : memref<16x512xbf16, #tpu.memory_space<vmem>>, vector<16x288xbf16>
    %c3_143 = arith.constant 3 : index
    %c0_144 = arith.constant 0 : index
    %c0_145 = arith.constant 0 : index
    %207 = vector.load %arg4[%c3_143, %c0_144, %c0_145] : memref<9x16x16xbf16, #tpu.memory_space<vmem>>, vector<1x16x16xbf16>
    %208 = vector.shape_cast %207 : vector<1x16x16xbf16> to vector<16x16xbf16>
    %cst_146 = arith.constant dense<0.000000e+00> : vector<16x288xf32>
    %209 = tpu.matmul %208, %206, %cst_146 {dimension_numbers = #tpu.dot_dimension_numbers<[1], [0], [0], [1], [0, 0, 1, 1], [], []>} : vector<16x16xbf16>, vector<16x288xbf16>, vector<16x288xf32> -> vector<16x288xf32>
    %210 = arith.addf %205, %209 : vector<16x288xf32>
    %c0_147 = arith.constant 0 : index
    %c128_148 = arith.constant 128 : index
    %211 = vector.load %arg8[%c0_147, %c128_148] : memref<16x512xbf16, #tpu.memory_space<vmem>>, vector<16x288xbf16>
    %c4_149 = arith.constant 4 : index
    %c0_150 = arith.constant 0 : index
    %c0_151 = arith.constant 0 : index
    %212 = vector.load %arg4[%c4_149, %c0_150, %c0_151] : memref<9x16x16xbf16, #tpu.memory_space<vmem>>, vector<1x16x16xbf16>
    %213 = vector.shape_cast %212 : vector<1x16x16xbf16> to vector<16x16xbf16>
    %cst_152 = arith.constant dense<0.000000e+00> : vector<16x288xf32>
    %214 = tpu.matmul %213, %211, %cst_152 {dimension_numbers = #tpu.dot_dimension_numbers<[1], [0], [0], [1], [0, 0, 1, 1], [], []>} : vector<16x16xbf16>, vector<16x288xbf16>, vector<16x288xf32> -> vector<16x288xf32>
    %215 = arith.addf %210, %214 : vector<16x288xf32>
    %c0_153 = arith.constant 0 : index
    %c129_154 = arith.constant 129 : index
    %216 = vector.load %arg8[%c0_153, %c129_154] : memref<16x512xbf16, #tpu.memory_space<vmem>>, vector<16x288xbf16>
    %c5_155 = arith.constant 5 : index
    %c0_156 = arith.constant 0 : index
    %c0_157 = arith.constant 0 : index
    %217 = vector.load %arg4[%c5_155, %c0_156, %c0_157] : memref<9x16x16xbf16, #tpu.memory_space<vmem>>, vector<1x16x16xbf16>
    %218 = vector.shape_cast %217 : vector<1x16x16xbf16> to vector<16x16xbf16>
    %cst_158 = arith.constant dense<0.000000e+00> : vector<16x288xf32>
    %219 = tpu.matmul %218, %216, %cst_158 {dimension_numbers = #tpu.dot_dimension_numbers<[1], [0], [0], [1], [0, 0, 1, 1], [], []>} : vector<16x16xbf16>, vector<16x288xbf16>, vector<16x288xf32> -> vector<16x288xf32>
    %220 = arith.addf %215, %219 : vector<16x288xf32>
    %c0_159 = arith.constant 0 : index
    %c145_160 = arith.constant 145 : index
    %221 = vector.load %arg8[%c0_159, %c145_160] : memref<16x512xbf16, #tpu.memory_space<vmem>>, vector<16x288xbf16>
    %c6_161 = arith.constant 6 : index
    %c0_162 = arith.constant 0 : index
    %c0_163 = arith.constant 0 : index
    %222 = vector.load %arg4[%c6_161, %c0_162, %c0_163] : memref<9x16x16xbf16, #tpu.memory_space<vmem>>, vector<1x16x16xbf16>
    %223 = vector.shape_cast %222 : vector<1x16x16xbf16> to vector<16x16xbf16>
    %cst_164 = arith.constant dense<0.000000e+00> : vector<16x288xf32>
    %224 = tpu.matmul %223, %221, %cst_164 {dimension_numbers = #tpu.dot_dimension_numbers<[1], [0], [0], [1], [0, 0, 1, 1], [], []>} : vector<16x16xbf16>, vector<16x288xbf16>, vector<16x288xf32> -> vector<16x288xf32>
    %225 = arith.addf %220, %224 : vector<16x288xf32>
    %c0_165 = arith.constant 0 : index
    %c146_166 = arith.constant 146 : index
    %226 = vector.load %arg8[%c0_165, %c146_166] : memref<16x512xbf16, #tpu.memory_space<vmem>>, vector<16x288xbf16>
    %c7_167 = arith.constant 7 : index
    %c0_168 = arith.constant 0 : index
    %c0_169 = arith.constant 0 : index
    %227 = vector.load %arg4[%c7_167, %c0_168, %c0_169] : memref<9x16x16xbf16, #tpu.memory_space<vmem>>, vector<1x16x16xbf16>
    %228 = vector.shape_cast %227 : vector<1x16x16xbf16> to vector<16x16xbf16>
    %cst_170 = arith.constant dense<0.000000e+00> : vector<16x288xf32>
    %229 = tpu.matmul %228, %226, %cst_170 {dimension_numbers = #tpu.dot_dimension_numbers<[1], [0], [0], [1], [0, 0, 1, 1], [], []>} : vector<16x16xbf16>, vector<16x288xbf16>, vector<16x288xf32> -> vector<16x288xf32>
    %230 = arith.addf %225, %229 : vector<16x288xf32>
    %c0_171 = arith.constant 0 : index
    %c147_172 = arith.constant 147 : index
    %231 = vector.load %arg8[%c0_171, %c147_172] : memref<16x512xbf16, #tpu.memory_space<vmem>>, vector<16x288xbf16>
    %c8_173 = arith.constant 8 : index
    %c0_174 = arith.constant 0 : index
    %c0_175 = arith.constant 0 : index
    %232 = vector.load %arg4[%c8_173, %c0_174, %c0_175] : memref<9x16x16xbf16, #tpu.memory_space<vmem>>, vector<1x16x16xbf16>
    %233 = vector.shape_cast %232 : vector<1x16x16xbf16> to vector<16x16xbf16>
    %cst_176 = arith.constant dense<0.000000e+00> : vector<16x288xf32>
    %234 = tpu.matmul %233, %231, %cst_176 {dimension_numbers = #tpu.dot_dimension_numbers<[1], [0], [0], [1], [0, 0, 1, 1], [], []>} : vector<16x16xbf16>, vector<16x288xbf16>, vector<16x288xf32> -> vector<16x288xf32>
    %235 = arith.addf %230, %234 : vector<16x288xf32>
    %236 = vector.extract_strided_slice %235 {offsets = [0, 0], sizes = [4, 288], strides = [1, 1]} : vector<16x288xf32> to vector<4x288xf32>
    %237 = vector.extract_strided_slice %235 {offsets = [4, 0], sizes = [4, 288], strides = [1, 1]} : vector<16x288xf32> to vector<4x288xf32>
    %238 = arith.addf %236, %237 : vector<4x288xf32>
    %239 = vector.extract_strided_slice %235 {offsets = [8, 0], sizes = [4, 288], strides = [1, 1]} : vector<16x288xf32> to vector<4x288xf32>
    %240 = arith.addf %238, %239 : vector<4x288xf32>
    %241 = vector.extract_strided_slice %235 {offsets = [12, 0], sizes = [4, 288], strides = [1, 1]} : vector<16x288xf32> to vector<4x288xf32>
    %242 = arith.addf %240, %241 : vector<4x288xf32>
    %243 = vector.broadcast %0 : vector<1x288xf32> to vector<4x288xf32>
    %244 = arith.mulf %242, %243 : vector<4x288xf32>
    %cst_177 = arith.constant dense<0.000000e+00> : vector<4xf32>
    %245 = vector.multi_reduction <add>, %244, %cst_177 [1] : vector<4x288xf32> to vector<4xf32>
    %246 = vector.shape_cast %245 : vector<4xf32> to vector<4x1xf32>
    %cst_178 = arith.constant 9.765625E-4 : f32
    %247 = vector.broadcast %cst_178 : f32 to vector<4x1xf32>
    %248 = arith.mulf %246, %247 : vector<4x1xf32>
    %249 = tpu.concatenate %248, %248, %248, %248 in 0 : vector<4x1xf32>, vector<4x1xf32>, vector<4x1xf32>, vector<4x1xf32> -> vector<16x1xf32>
    %250 = vector.broadcast %249 : vector<16x1xf32> to vector<16x288xf32>
    %251 = arith.subf %235, %250 : vector<16x288xf32>
    %252 = vector.broadcast %0 : vector<1x288xf32> to vector<16x288xf32>
    %253 = arith.mulf %251, %252 : vector<16x288xf32>
    %254 = arith.mulf %253, %253 : vector<16x288xf32>
    %255 = vector.extract_strided_slice %254 {offsets = [0, 0], sizes = [4, 288], strides = [1, 1]} : vector<16x288xf32> to vector<4x288xf32>
    %256 = vector.extract_strided_slice %254 {offsets = [4, 0], sizes = [4, 288], strides = [1, 1]} : vector<16x288xf32> to vector<4x288xf32>
    %257 = arith.addf %255, %256 : vector<4x288xf32>
    %258 = vector.extract_strided_slice %254 {offsets = [8, 0], sizes = [4, 288], strides = [1, 1]} : vector<16x288xf32> to vector<4x288xf32>
    %259 = arith.addf %257, %258 : vector<4x288xf32>
    %260 = vector.extract_strided_slice %254 {offsets = [12, 0], sizes = [4, 288], strides = [1, 1]} : vector<16x288xf32> to vector<4x288xf32>
    %261 = arith.addf %259, %260 : vector<4x288xf32>
    %cst_179 = arith.constant dense<0.000000e+00> : vector<4xf32>
    %262 = vector.multi_reduction <add>, %261, %cst_179 [1] : vector<4x288xf32> to vector<4xf32>
    %263 = vector.shape_cast %262 : vector<4xf32> to vector<4x1xf32>
    %cst_180 = arith.constant 9.765625E-4 : f32
    %264 = vector.broadcast %cst_180 : f32 to vector<4x1xf32>
    %265 = arith.mulf %263, %264 : vector<4x1xf32>
    %cst_181 = arith.constant 9.99999974E-6 : f32
    %266 = vector.broadcast %cst_181 : f32 to vector<4x1xf32>
    %267 = arith.addf %265, %266 : vector<4x1xf32>
    %268 = math.rsqrt %267 : vector<4x1xf32>
    %269 = tpu.concatenate %268, %268, %268, %268 in 0 : vector<4x1xf32>, vector<4x1xf32>, vector<4x1xf32>, vector<4x1xf32> -> vector<16x1xf32>
    %270 = vector.broadcast %269 : vector<16x1xf32> to vector<16x288xf32>
    %271 = arith.mulf %253, %270 : vector<16x288xf32>
    %272 = arith.addf %271, %94 : vector<16x288xf32>
    %cst_182 = arith.constant 0.000000e+00 : f32
    %273 = vector.broadcast %cst_182 : f32 to vector<16x288xf32>
    %274 = arith.cmpf oge, %272, %273 : vector<16x288xf32>
    %cst_183 = arith.constant 0.00999999977 : f32
    %275 = vector.broadcast %cst_183 : f32 to vector<16x288xf32>
    %276 = arith.mulf %275, %272 : vector<16x288xf32>
    %277 = arith.select %274, %272, %276 : vector<16x288xi1>, vector<16x288xf32>
    %c0_184 = arith.constant 0 : index
    %c0_185 = arith.constant 0 : index
    %c0_186 = arith.constant 0 : index
    %278 = vector.load %arg6[%c0_184, %c0_185, %c0_186] : memref<1x16x384xf32, #tpu.memory_space<vmem>>, vector<1x16x288xf32>
    %279 = vector.shape_cast %278 : vector<1x16x288xf32> to vector<16x288xf32>
    %280 = vector.shape_cast %277 : vector<16x288xf32> to vector<1x16x288xf32>
    tpu.vector_store %arg6[%c0_184, %c0_185, %c0_186], %280 {strides = array<i32>} : memref<1x16x384xf32, #tpu.memory_space<vmem>>, vector<1x16x288xf32>,
    %cst_187 = arith.constant 0.000000e+00 : f32
    %281 = vector.broadcast %cst_187 : f32 to vector<16x96xf32>
    %c0_188 = arith.constant 0 : index
    %c0_189 = arith.constant 0 : index
    %c288 = arith.constant 288 : index
    %282 = vector.load %arg6[%c0_188, %c0_189, %c288] : memref<1x16x384xf32, #tpu.memory_space<vmem>>, vector<1x16x96xf32>
    %283 = vector.shape_cast %282 : vector<1x16x96xf32> to vector<16x96xf32>
    %284 = vector.shape_cast %281 : vector<16x96xf32> to vector<1x16x96xf32>
    tpu.vector_store %arg6[%c0_188, %c0_189, %c288], %284 {strides = array<i32>} : memref<1x16x384xf32, #tpu.memory_space<vmem>>, vector<1x16x96xf32>,
    return
  }
  func.func @transform_0(%arg0: i32) -> (i32, i32, i32) {
    %c0_i32 = arith.constant 0 : i32
    %c0_i32_0 = arith.constant 0 : i32
    %c0_i32_1 = arith.constant 0 : i32
    return %arg0, %c0_i32, %c0_i32_0 : i32, i32, i32
  }
  func.func @transform_1(%arg0: i32) -> (i32, i32, i32) {
    %c0_i32 = arith.constant 0 : i32
    %c0_i32_0 = arith.constant 0 : i32
    %c0_i32_1 = arith.constant 0 : i32
    %c0_i32_2 = arith.constant 0 : i32
    return %c0_i32, %c0_i32_0, %c0_i32_1 : i32, i32, i32
  }
  func.func @transform_2(%arg0: i32) -> (i32, i32, i32) {
    %c0_i32 = arith.constant 0 : i32
    %c0_i32_0 = arith.constant 0 : i32
    %c0_i32_1 = arith.constant 0 : i32
    %c0_i32_2 = arith.constant 0 : i32
    return %c0_i32, %c0_i32_0, %c0_i32_1 : i32, i32, i32
  }
  func.func @transform_3(%arg0: i32) -> (i32, i32, i32) {
    %c0_i32 = arith.constant 0 : i32
    %c0_i32_0 = arith.constant 0 : i32
    %c0_i32_1 = arith.constant 0 : i32
    %c0_i32_2 = arith.constant 0 : i32
    return %c0_i32, %c0_i32_0, %c0_i32_1 : i32, i32, i32
  }
  func.func @transform_4(%arg0: i32) -> (i32, i32) {
    %c0_i32 = arith.constant 0 : i32
    %c0_i32_0 = arith.constant 0 : i32
    %c0_i32_1 = arith.constant 0 : i32
    return %c0_i32, %c0_i32_0 : i32, i32
  }
  func.func @transform_5(%arg0: i32) -> (i32, i32, i32) {
    %c0_i32 = arith.constant 0 : i32
    %c0_i32_0 = arith.constant 0 : i32
    %c0_i32_1 = arith.constant 0 : i32
    return %arg0, %c0_i32, %c0_i32_0 : i32, i32, i32
  }
}

</mosaic_0001>

<bundles_post_ra>
// kernel: tile.8
= control target key start
LH: loop header
LB: loop body
LE: loop exit
PB: predicated region body
PF: predicated region fallthrough
CT: control target
= control target key end

     0   :  { %s28_s0 = inlined_call_operand.vmem [shape: f32[18], index: 0, kind: input, shape index: {}]   ;;  %s29_s1 = inlined_call_operand.vmem [shape: f32[16,18], index: 1, kind: output, shape index: {}]  }
   0x1   :  { %v4_v0 = vld [vmem:[%s28_s0] ss:$0 sm:$0xff] }
   0x2   :  { %5 = vst [vmem:[%s29_s1] sm:$0xff] %v4_v0  ;;  %8 = vst [vmem:[%s29_s1 + $0x8] sm:$0xff] %v4_v0 }

// kernel: tile.9
= control target key start
LH: loop header
LB: loop body
LE: loop exit
PB: predicated region body
PF: predicated region fallthrough
CT: control target
= control target key end

     0   :  { %vm9_vm0 = vcmask 15360   ;;  %vm22_vm1 = vcmask 31744   ;;  %s169_s14 = smov 126   ;;  %s170_s15 = smov 108   ;;  %vm3_vm2 = vcmask 146432   ;;  %vm13_vm3 = vcmask 130048   ;;  %s257_s0 = inlined_call_operand.vmem [shape: f32[16,18], index: 0, kind: input, shape index: {}]   ;;  %s258_s1 = inlined_call_operand.vmem [shape: f32[1,288], index: 1, kind: output, shape index: {}]  }
   0x1   :  { %v135_v0 = vld [vmem:[%s257_s0 + $0x7] sm:$0x1]   ;;  %v139_v3 = vld [vmem:[%s257_s0 + $0x6] sm:$0x1]   ;;  %v137_v4 = vld [vmem:[%s257_s0 + $0xe] sm:$0x1]  }
   0x2   :  { %v136_v1 = vld [vmem:[%s257_s0 + $0x7] sm:$0x1]   ;;  %34 = vrot.lane.b32.xlu1 %v139_v3, %s170_s15  ;;  %v138_v5 = vld [vmem:[%s257_s0 + $0xe] sm:$0x1]   ;;  %v140_v7 = vld [vmem:[%s257_s0 + $0xd] sm:$0x1]  }
   0x3   :  { %v10_v2 = vsel %vm9_vm0, %v136_v1, %v135_v0  ;;  %v23_v6 = vsel %vm22_vm1, %v138_v5, %v137_v4  ;;  %s171_s20 = smov 124   ;;  %s172_s21 = smov 106   ;;  %v141_v8 = vld [vmem:[%s257_s0 + $0x5] sm:$0x1]   ;;  %v142_v9 = vld [vmem:[%s257_s0 + $0xc] sm:$0x1]  }
   0x4   :  { %11 = vrot.lane.b32.xlu0 %v10_v2, %s169_s14  ;;  %v2_v10 = vld [vmem:[%s257_s0] sm:$0x1]   ;;  %s173_s28 = smov 90   ;;  %s174_s29 = smov 88   ;;  %v143_v11 = vld [vmem:[%s257_s0 + $0x4] sm:$0x1]  }
   0x5   :  { %4 = vst.msk [vmem:[#allocation0] sm:$0x1] %vm3_vm2, %v2_v10   ;;  %v144_v12 = vld [vmem:[%s257_s0 + $0xb] sm:$0x1]   ;;  %s175_s5 = smov 72   ;;  %s176_s6 = smov 70  }
   0x6   :  { %40 = vrot.lane.b32.xlu1 %v140_v7, %s172_s21  ;;  %v145_v13 = vld [vmem:[%s257_s0 + $0x3] sm:$0x1]   ;;  %v146_v14 = vld [vmem:[%s257_s0 + $0xa] sm:$0x1]   ;;  %s177_s11 = smov 54   ;;  %s178_s12 = smov 52  }
   0x7   :  { %v147_v15 = vld [vmem:[%s257_s0 + $0x2] sm:$0x1]   ;;  %v148_v16 = vld [vmem:[%s257_s0 + $0x9] sm:$0x1]   ;;  %s179_s17 = smov 36   ;;  %s180_s18 = smov 34  }
   0x8   :  { %24 = vrot.lane.b32.xlu0 %v23_v6, %s171_s20  ;;  %v149_v17 = vld [vmem:[%s257_s0 + $0x1] sm:$0x1]   ;;  %v150_v18 = vld [vmem:[%s257_s0 + $0x8] sm:$0x1]   ;;  %s181_s23 = smov 18   ;;  %s182_s24 = smov 16  }
   0x9   :  { %v151_v19 = vld [vmem:[%s257_s0 + $0xf] sm:$0x1]   ;;  %s183_s0 = smov 14   ;;  %vm16_vm4 = vcmask 1048560   ;;  %vm36_vm5 = vcmask 1032032   ;;  %vm26_vm6 = vcmask 113664  }
   0xa   :  { %53 = vrot.lane.b32.xlu1 %v142_v9, %s174_s29  ;;  %vm29_vm7 = vcmask 1048544   ;;  %vm42_vm8 = vcmask 1015632   ;;  %vm49_vm9 = vcmask 884432   ;;  %vm55_vm10 = vcmask 868032  }
   0xb   :  { %vm62_vm11 = vcmask 736832   ;;  %vm68_vm12 = vcmask 720432   ;;  %vm75_vm13 = vcmask 589232   ;;  %vm81_vm14 = vcmask 572832  }
   0xc   :  { %47 = vrot.lane.b32.xlu0 %v141_v8, %s173_s28  ;;  %vm88_vm15 = vcmask 441632   ;;  %vm94_vm0 = vcmask 425232   ;;  %vm101_vm1 = vcmask 294032   ;;  %vm107_vm2 = vcmask 277632  }
   0xe   :  { %66 = vrot.lane.b32.xlu1 %v144_v12, %s176_s6 }
  0x10   :  { %60 = vrot.lane.b32.xlu0 %v143_v11, %s175_s5 }
  0x12   :  { %79 = vrot.lane.b32.xlu1 %v146_v14, %s178_s12 }
  0x14   :  { %73 = vrot.lane.b32.xlu0 %v145_v13, %s177_s11 }
  0x16   :  { %92 = vrot.lane.b32.xlu1 %v148_v16, %s180_s18 }
  0x18   :  { %86 = vrot.lane.b32.xlu0 %v147_v15, %s179_s17 }
  0x1a   :  { %105 = vrot.lane.b32.xlu1 %v150_v18, %s182_s24 }
  0x1c   :  { %99 = vrot.lane.b32.xlu0 %v149_v17, %s181_s23 }
  0x20   :  { %112 = vrot.lane.b32.xlu0 %v151_v19, %s183_s0 }
  0x74   :  { %v35_v21 = vpop.permute.xlu1 %34  }
  0x76   :  { %v12_v20 = vpop.permute.xlu0 %11  }
  0x77   :  { %15 = vst.msk [vmem:[#allocation0 + $0x8] sm:$0x1] %vm13_vm3, %v12_v20   ;;  %vm114_vm3 = vcmask 261232  }
  0x78   :  { %17 = vst.msk [vmem:[#allocation0] sm:$0x1] %vm16_vm4, %v12_v20   ;;  %v41_v23 = vpop.permute.xlu1 %40  }
  0x79   :  { %37 = vst.msk [vmem:[#allocation0] sm:$0x1] %vm36_vm5, %v35_v21  }
  0x7a   :  { %v25_v22 = vpop.permute.xlu0 %24  }
  0x7b   :  { %28 = vst.msk [vmem:[#allocation0 + $0x10] sm:$0x1] %vm26_vm6, %v25_v22  }
  0x7c   :  { %31 = vst.msk [vmem:[#allocation0 + $0x8] sm:$0x1] %vm29_vm7, %v25_v22   ;;  %v54_v25 = vpop.permute.xlu1 %53  }
  0x7d   :  { %44 = vst.msk [vmem:[#allocation0 + $0x8] sm:$0x1] %vm42_vm8, %v41_v23  }
  0x7e   :  { %v48_v24 = vpop.permute.xlu0 %47   ;;  %57 = vst.msk [vmem:[#allocation0 + $0x8] sm:$0x1] %vm55_vm10, %v54_v25  }
  0x7f   :  { %50 = vst.msk [vmem:[#allocation0] sm:$0x1] %vm49_vm9, %v48_v24  }
  0x80   :  { %v67_v27 = vpop.permute.xlu1 %66  }
  0x81   :  { %70 = vst.msk [vmem:[#allocation0 + $0x8] sm:$0x1] %vm68_vm12, %v67_v27  }
  0x82   :  { %v61_v26 = vpop.permute.xlu0 %60  }
  0x83   :  { %63 = vst.msk [vmem:[#allocation0] sm:$0x1] %vm62_vm11, %v61_v26  }
  0x84   :  { %v80_v29 = vpop.permute.xlu1 %79  }
  0x85   :  { %83 = vst.msk [vmem:[#allocation0 + $0x8] sm:$0x1] %vm81_vm14, %v80_v29  }
  0x86   :  { %v74_v28 = vpop.permute.xlu0 %73  }
  0x87   :  { %76 = vst.msk [vmem:[#allocation0] sm:$0x1] %vm75_vm13, %v74_v28  }
  0x88   :  { %v93_v31 = vpop.permute.xlu1 %92  }
  0x89   :  { %96 = vst.msk [vmem:[#allocation0 + $0x8] sm:$0x1] %vm94_vm0, %v93_v31  }
  0x8a   :  { %v87_v30 = vpop.permute.xlu0 %86  }
  0x8b   :  { %89 = vst.msk [vmem:[#allocation0] sm:$0x1] %vm88_vm15, %v87_v30  }
  0x8c   :  { %v106_v33 = vpop.permute.xlu1 %105  }
  0x8d   :  { %109 = vst.msk [vmem:[#allocation0 + $0x8] sm:$0x1] %vm107_vm2, %v106_v33  }
  0x8e   :  { %v100_v32 = vpop.permute.xlu0 %99  }
  0x8f   :  { %102 = vst.msk [vmem:[#allocation0] sm:$0x1] %vm101_vm1, %v100_v32  }
  0x92   :  { %v113_v34 = vpop.permute.xlu0 %112  }
  0x93   :  { %116 = vst.msk [vmem:[#allocation0 + $0x10] sm:$0x1] %vm114_vm3, %v113_v34  }
  0x94   :  { %v124_v36 = vld [vmem:[#allocation0 + $0x8] sm:$0x1] }
  0x95   :  { %152 = vst [vmem:[%s258_s1 + $0x1] sm:$0x1] %v124_v36 }
  0x96   :  { %v120_v35 = vld [vmem:[#allocation0] sm:$0x1] }
  0x97   :  { %122 = vst [vmem:[%s258_s1] sm:$0x1] %v120_v35 }
  0x9a   :  { %v129_v37 = vld [vmem:[#allocation0 + $0x10] sm:$0x1] }
  0x9b   :  { %153 = vst [vmem:[%s258_s1 + $0x2] sm:$0x1] %v129_v37 }

// kernel: up_block_forward_pallas.1
= control target key start
LH: loop header
LB: loop body
LE: loop exit
PB: predicated region body
PF: predicated region fallthrough
CT: control target
= control target key end

     0   :  { %s4488_s18 = smov 0   ;;  %s5067_s0 = inlined_call_operand.vmem [shape: bf16[2,8,384], index: 0, kind: input, shape index: {}]   ;;  %s5068_s1 = inlined_call_operand.vmem [shape: bf16[9,16,8], index: 1, kind: input, shape index: {}]   ;;  %s5069_s2 = inlined_call_operand.vmem [shape: bf16[9,16,16], index: 2, kind: input, shape index: {}]   ;;  %s5070_s3 = inlined_call_operand.vmem [shape: bf16[9,16,16], index: 3, kind: input, shape index: {}]   ;;  %s5071_s4 = inlined_call_operand.vmem [shape: f32[1,288], index: 4, kind: input, shape index: {}]   ;;  %s5072_s5 = inlined_call_operand.vmem [shape: f32[2,16,384], index: 5, kind: output, shape index: {}]  }
   0x1 LB: > { %s3811_s19 = sadd.s32 4294967295, %s4440_s18   ;;  %p3815_p0 = scmp.ge.s32.totalorder %s4440_s18, 1  ;;  %s4440_s18 = sphi %s4488_s18, %s15_s18  }
   0x2   : > { %p187_p1 = scmp.lt.s32.totalorder %s4440_s18, 3 }
   0x4   : > { %p188_p2 = pnand %p3815_p0, %p187_p1 }
   0x5   : > { %p215_p3 = scmp.lt.s32.totalorder (!%p188_p2), %s3811_s19, 1  ;;  %v4442_v0 = vmov (!%p188_p2), 0.0   ;;  %vm4443_vm0 = vmmov (!%p188_p2), 0   ;;  %v4444_v1 = vmov (!%p188_p2), 0   ;;  %s4445_s24 = smov (!%p188_p2), 127   ;;  %vm260_vm1 = vcmask (!%p188_p2), 1043456  }
   0x6   : > { %191 = sbr.rel (%p188_p2) target bundleno = 3143 (0xc47), region = 40  ;;  %4015 = vmatprep.subr.bf16.mxu1 (!%p188_p2), %v4442_v0  ;;  %4017 = vmatprep.mubr.msk.bf16.mxu1 (!%p188_p2), %vm4443_vm0, %v4442_v0  ;;  %1440 = vst [vmem:[#allocation2] sm:$0xff] (!%p188_p2), %v4444_v1  ;;  %s4446_s25 = smov (!%p188_p2), 126   ;;  %v4400_v9 = vld [vmem:[%s5068_s1 + $0x8] sm:$0xff] (!%p188_p2)   ;;  %vm256_vm2 = vcmask (!%p188_p2), 64512   ;;  %vm253_vm3 = vcmask (!%p188_p2), 1039360  }
   0x7   : > { %302 = vmatprep.mubr.bf16.mxu0 (!%p188_p2), %v4444_v1  ;;  %4395 = vset.pattern.permute.xlu1 (!%p188_p2), %v4444_v1  ;;  %s4447_s26 = smov (!%p188_p2), 110   ;;  %s4448_s27 = smov (!%p188_p2), 109   ;;  %vm469_vm4 = vcmask (!%p188_p2), 1031168   ;;  %v4401_v20 = vld [vmem:[%s5068_s1] sm:$0xff] (!%p188_p2)   ;;  %vm5076_vm5 = vcmask (!%p188_p2), 900096   ;;  %v4402_v28 = vld [vmem:[%s5068_s1 + $0x10] sm:$0xff] (!%p188_p2)  }
   0x8   : > { %4396 = vset.pattern.permute.xlu0 (!%p188_p2), %v4444_v1  ;;  %s4449_s28 = smov (!%p188_p2), 108   ;;  %s4450_s29 = smov (!%p188_p2), 92   ;;  %vm5075_vm6 = vcmask (!%p188_p2), 891904   ;;  %v4403_v36 = vld [vmem:[%s5068_s1 + $0x18] sm:$0xff] (!%p188_p2)   ;;  %vm826_vm7 = vcmask (!%p188_p2), 883712   ;;  %v4404_v44 = vld [vmem:[%s5068_s1 + $0x20] sm:$0xff] (!%p188_p2)  }
   0x9   : > { %s4451_s30 = smov (!%p188_p2), 91   ;;  %s4452_s6 = smov (!%p188_p2), 90   ;;  %vm945_vm8 = vcmask (!%p188_p2), 752640   ;;  %v4405_v52 = vld [vmem:[%s5068_s1 + $0x28] sm:$0xff] (!%p188_p2)   ;;  %vm1064_vm9 = vcmask (!%p188_p2), 744448   ;;  %v4406_v60 = vld [vmem:[%s5068_s1 + $0x30] sm:$0xff] (!%p188_p2)  }
   0xa   : > { %vm1183_vm10 = vcmask (!%p188_p2), 736256   ;;  %vm5074_vm11 = vcmask (!%p188_p2), 257024   ;;  %vm5073_vm12 = vcmask (!%p188_p2), 1047808   ;;  %s4453_s7 = smov (!%p188_p2), 18   ;;  %s4454_s8 = smov (!%p188_p2), 19  }
   0xb   : > { %1442 = vst.msk [vmem:[#allocation2 + $0x18] sm:$0xff] (!%p188_p2), %vm5073_vm12, %v4444_v1  ;;  %2596 = vst.msk [vmem:[#allocation3 + $0x18] sm:$0xff] (!%p188_p2), %vm5073_vm12, %v4444_v1  ;;  %s4455_s9 = smov (!%p188_p2), 17   ;;  %s4456_s10 = smov (!%p188_p2), 1  }
   0xc   : > { %s4457_s11 = smov (!%p188_p2), 111  }
   0xd   : > { %s5086_s19 = smov (!%p215_p3, %s3811_s19), 1 }
   0xe   : > { %s4369_s20 = smul.u32 12, %s5086_s19 }
  0x10   : > { %s219_s23 = scalar_lea.vmem %s5067_s0, %s4369_s20 }
  0x11   : > { %v4397_v2 = vld [vmem:[%s219_s23 + $0x8] ss:$0 sps:$4 sm:$0xff]   ;;  %v227_v3 = vld [vmem:[%s219_s23] sm:$0xff] }
  0x12   : > { %v3821_v4 = vcombine.low %v227_v3, %v227_v3  ;;  %251 = vrot.lane.b32.xlu1 %v4397_v2, %s4445_s24  ;;  %v3822_v5 = vcombine.high %v227_v3, %v227_v3  ;;  %v369_v10 = vsel %vm260_vm1, %v4397_v2, 0 }
  0x14   : > { %247 = vrot.lane.b32.xlu0 %v3821_v4, %s4445_s24  ;;  %v363_v17 = vsel %vm260_vm1, %v3821_v4, 0 }
  0x16   : > { %463 = vrot.lane.b32.xlu1 %v3821_v4, %s4446_s25 }
  0x18   : > { %249 = vrot.lane.b32.xlu0 %v3822_v5, %s4445_s24 }
  0x1a   : > { %467 = vrot.lane.b32.xlu1 %v4397_v2, %s4446_s25 }
  0x1c   : > { %465 = vrot.lane.b32.xlu0 %v3822_v5, %s4446_s25 }
  0x1e   : > { %584 = vrot.lane.b32.xlu1 %v3822_v5, %s4447_s26 }
  0x20   : > { %582 = vrot.lane.b32.xlu0 %v3821_v4, %s4447_s26 }
  0x22   : > { %701 = vrot.lane.b32.xlu1 %v3821_v4, %s4448_s27 }
  0x24   : > { %586 = vrot.lane.b32.xlu0 %v4397_v2, %s4447_s26 }
  0x26   : > { %705 = vrot.lane.b32.xlu1 %v4397_v2, %s4448_s27 }
  0x28   : > { %703 = vrot.lane.b32.xlu0 %v3822_v5, %s4448_s27 }
  0x2a   : > { %822 = vrot.lane.b32.xlu1 %v3822_v5, %s4449_s28 }
  0x2c   : > { %820 = vrot.lane.b32.xlu0 %v3821_v4, %s4449_s28 }
  0x2e   : > { %939 = vrot.lane.b32.xlu1 %v3821_v4, %s4450_s29 }
  0x30   : > { %824 = vrot.lane.b32.xlu0 %v4397_v2, %s4449_s28 }
  0x32   : > { %943 = vrot.lane.b32.xlu1 %v4397_v2, %s4450_s29 }
  0x34   : > { %941 = vrot.lane.b32.xlu0 %v3822_v5, %s4450_s29 }
  0x36   : > { %1060 = vrot.lane.b32.xlu1 %v3822_v5, %s4451_s30 }
  0x38   : > { %1058 = vrot.lane.b32.xlu0 %v3821_v4, %s4451_s30 }
  0x3a   : > { %1177 = vrot.lane.b32.xlu1 %v3821_v4, %s4452_s6 }
  0x3c   : > { %1062 = vrot.lane.b32.xlu0 %v4397_v2, %s4451_s30  ;;  %s4370_s30 = smul.u32 48, %s5086_s19 }
  0x3e   : > { %1181 = vrot.lane.b32.xlu1 %v4397_v2, %s4452_s6  ;;  %s224_s12 = scalar_lea.vmem %s5072_s5, %s4370_s30 }
  0x40   : > { %1179 = vrot.lane.b32.xlu0 %v3822_v5, %s4452_s6 }
  0x84   : > { %v252_v6 = vpop.permute.xlu1 %251 }
  0x85   : > { %v268_v8 = vsel %vm260_vm1, %v252_v6, 0 }
  0x86   : > { %v248_v7 = vpop.permute.xlu0 %247  ;;  %4016 = vmatpush3.bf16.msra.mxu1 %v268_v8 }
  0x87   : > { %4021 = vmatprep.subr.bf16.mxu1 %v4442_v0 }
  0x88   : > { %v464_v11 = vpop.permute.xlu1 %463 }
  0x89   : > { %4018 = vmatmul.mubr.msk.bf16.vlgmr.msra.gmra.mrb[0].mxu1 %vm256_vm2, %v4400_v9 }
  0x8a   : > { %v250_v12 = vpop.permute.xlu0 %249  ;;  %4022 = vmatpush3.bf16.msra.mxu1 %v369_v10  ;;  %4023 = vmatprep.mubr.msk.bf16.mxu1 %vm4443_vm0, %v4442_v0  ;;  %v4408_v10 = vld [vmem:[%s5068_s1 + $0x40] sm:$0xff]  }
  0x8b   : > { %v255_v13 = vsel %vm253_vm3, %v250_v12, %v252_v6  ;;  %v254_v14 = vsel %vm253_vm3, %v248_v7, %v250_v12  ;;  %4027 = vmatprep.subr.bf16.mxu1 %v4442_v0  ;;  %v4407_v6 = vld [vmem:[%s5068_s1 + $0x38] sm:$0xff]   ;;  %v1316_v12 = vlaneseq }
  0x8c   : > { %3824 = vmatprep.subr.msk.bf16.mxu0 %vm260_vm1, %v255_v13  ;;  %v262_v15 = vsel %vm260_vm1, %v254_v14, 0  ;;  %v468_v16 = vpop.permute.xlu1 %467 }
  0x8d   : > { %271 = vmatpush1.bf16.msra.mxu0 %v262_v15  ;;  %v482_v22 = vsel %vm260_vm1, %v468_v16, 0 }
  0x8e   : > { %3828 = vmatprep.subr.msk.bf16.mxu0 %vm260_vm1, %v3822_v5  ;;  %v466_v18 = vpop.permute.xlu0 %465 }
  0x8f   : > { %v471_v19 = vsel %vm469_vm4, %v466_v18, %v468_v16  ;;  %v470_v23 = vsel %vm469_vm4, %v464_v11, %v466_v18  ;;  %v1317_v18 = vshrl.u32 %v1316_v12, 7 }
  0x90   : > { %3825 = vmatmul.mubr.msk.bf16.vlgmr.msra.gmra.mrb[0].mxu0 %vm256_vm2, %v4400_v9  ;;  %v585_v24 = vpop.permute.xlu1 %584  ;;  %v476_v26 = vsel %vm260_vm1, %v470_v23, 0 }
  0x91   : > { %372 = vmatpush1.bf16.msra.mxu0 %v363_v17  ;;  %403 = vmatprep.mubr.bf16.mxu0 %v4444_v1 }
  0x92   : > { %3834 = vmatprep.subr.msk.bf16.mxu0 %vm260_vm1, %v471_v19  ;;  %v583_v21 = vpop.permute.xlu0 %582 }
  0x93   : > { %v589_v31 = vsel %vm5076_vm5, %v583_v21, %v585_v24 }
  0x94   : > { %v702_v29 = vpop.permute.xlu1 %701  ;;  %v595_v34 = vsel %vm260_vm1, %v589_v31, 0 }
  0x95   : > { %4024 = vmatmul.mubr.msk.bf16.vlgmr.msra.gmra.mrb[0].mxu1 %vm256_vm2, %v4401_v20 }
  0x96   : > { %4028 = vmatpush3.bf16.msra.mxu1 %v482_v22  ;;  %4029 = vmatprep.mubr.msk.bf16.mxu1 %vm4443_vm0, %v4442_v0  ;;  %v587_v25 = vpop.permute.xlu0 %586 }
  0x97   : > { %4033 = vmatprep.subr.bf16.mxu1 %v4442_v0  ;;  %v590_v27 = vsel %vm5076_vm5, %v585_v24, %v587_v25  ;;  %v601_v30 = vsel %vm260_vm1, %v587_v25, 0  ;;  %v1318_v25 = vsub.s32 0, %v1317_v18 }
  0x98   : > { %v706_v32 = vpop.permute.xlu1 %705 }
  0x99   : > { %v720_v38 = vsel %vm260_vm1, %v706_v32, 0 }
  0x9a   : > { %v704_v33 = vpop.permute.xlu0 %703 }
  0x9b   : > { %v709_v35 = vsel %vm5075_vm6, %v704_v33, %v706_v32  ;;  %v708_v39 = vsel %vm5075_vm6, %v702_v29, %v704_v33  ;;  %v1326_v29 = vsub.s32 2, %v1317_v18  ;;  %v226_v32 = vld [vmem:[%s5071_s4] sm:$0x7] }
  0x9c   : > { %3829 = vmatmul.mubr.msk.bf16.vlgmr.msra.gmra.mrb[0].mxu0 %vm256_vm2, %v4401_v20  ;;  %v823_v40 = vpop.permute.xlu1 %822  ;;  %v714_v42 = vsel %vm260_vm1, %v708_v39, 0 }
  0x9d   : > { %485 = vmatpush1.bf16.msra.mxu0 %v476_v26  ;;  %516 = vmatprep.mubr.bf16.mxu0 %v4444_v1 }
  0x9e   : > { %3840 = vmatprep.subr.msk.bf16.mxu0 %vm260_vm1, %v590_v27  ;;  %v821_v37 = vpop.permute.xlu0 %820 }
  0x9f   : > { %v827_v47 = vsel %vm826_vm7, %v821_v37, %v823_v40 }
  0xa0   : > { %v940_v45 = vpop.permute.xlu1 %939  ;;  %v833_v50 = vsel %vm260_vm1, %v827_v47, 0 }
  0xa1   : > { %4030 = vmatmul.mubr.msk.bf16.vlgmr.msra.gmra.mrb[0].mxu1 %vm256_vm2, %v4402_v28 }
  0xa2   : > { %4034 = vmatpush3.bf16.msra.mxu1 %v601_v30  ;;  %4035 = vmatprep.mubr.msk.bf16.mxu1 %vm4443_vm0, %v4442_v0  ;;  %v825_v41 = vpop.permute.xlu0 %824 }
  0xa3   : > { %4039 = vmatprep.subr.bf16.mxu1 %v4442_v0  ;;  %v828_v43 = vsel %vm826_vm7, %v823_v40, %v825_v41  ;;  %v839_v46 = vsel %vm260_vm1, %v825_v41, 0  ;;  %v4641_v40 = vrot.slane %v226_v32, %v1326_v29 }
  0xa4   : > { %v944_v48 = vpop.permute.xlu1 %943 }
  0xa5   : > { %v958_v54 = vsel %vm260_vm1, %v944_v48, 0 }
  0xa6   : > { %v942_v49 = vpop.permute.xlu0 %941 }
  0xa7   : > { %v947_v51 = vsel %vm945_vm8, %v942_v49, %v944_v48  ;;  %v946_v55 = vsel %vm945_vm8, %v940_v45, %v942_v49  ;;  %vm1448_vm8 = vcmask 261120  }
  0xa8   : > { %3835 = vmatmul.mubr.msk.bf16.vlgmr.msra.gmra.mrb[0].mxu0 %vm256_vm2, %v4402_v28  ;;  %v1061_v56 = vpop.permute.xlu1 %1060  ;;  %v952_v58 = vsel %vm260_vm1, %v946_v55, 0  ;;  %v1322_v28 = vsub.s32 1, %v1317_v18 }
  0xa9   : > { %604 = vmatpush1.bf16.msra.mxu0 %v595_v34  ;;  %635 = vmatprep.mubr.bf16.mxu0 %v4444_v1 }
  0xaa   : > { %3846 = vmatprep.subr.msk.bf16.mxu0 %vm260_vm1, %v709_v35  ;;  %v1059_v53 = vpop.permute.xlu0 %1058  ;;  %v4639_v39 = vrot.slane %v226_v32, %v1322_v28 }
  0xab   : > { %v1065_v63 = vsel %vm1064_vm9, %v1059_v53, %v1061_v56 }
  0xac   : > { %v1178_v61 = vpop.permute.xlu1 %1177  ;;  %v1071_v4 = vsel %vm260_vm1, %v1065_v63, 0 }
  0xad   : > { %4036 = vmatmul.mubr.msk.bf16.vlgmr.msra.gmra.mrb[0].mxu1 %vm256_vm2, %v4403_v36 }
  0xae   : > { %4040 = vmatpush3.bf16.msra.mxu1 %v720_v38  ;;  %4041 = vmatprep.mubr.msk.bf16.mxu1 %vm4443_vm0, %v4442_v0  ;;  %v1063_v57 = vpop.permute.xlu0 %1062 }
  0xaf   : > { %4045 = vmatprep.subr.bf16.mxu1 %v4442_v0  ;;  %v1066_v59 = vsel %vm1064_vm9, %v1061_v56, %v1063_v57  ;;  %v1077_v62 = vsel %vm260_vm1, %v1063_v57, 0  ;;  %vm1476_vm9 = vcmask 146432  }
  0xb0   : > { %v1182_v2 = vpop.permute.xlu1 %1181 }
  0xb1   : > { %v1196_v7 = vsel %vm260_vm1, %v1182_v2, 0 }
  0xb2   : > { %v1180_v3 = vpop.permute.xlu0 %1179 }
  0xb3   : > { %v1185_v5 = vsel %vm1183_vm10, %v1180_v3, %v1182_v2  ;;  %v1184_v8 = vsel %vm1183_vm10, %v1178_v61, %v1180_v3  ;;  %vm1483_vm10 = vcmask 130048  }
  0xb4   : > { %3841 = vmatmul.mubr.msk.bf16.vlgmr.msra.gmra.mrb[0].mxu0 %vm256_vm2, %v4403_v36  ;;  %v1190_v9 = vsel %vm260_vm1, %v1184_v8, 0  ;;  %v4637_v36 = vrot.slane %v226_v32, %v1318_v25 }
  0xb5   : > { %723 = vmatpush1.bf16.msra.mxu0 %v714_v42  ;;  %754 = vmatprep.mubr.bf16.mxu0 %v4444_v1 }
  0xb6   : > { %3852 = vmatprep.subr.msk.bf16.mxu0 %vm260_vm1, %v828_v43 }
  0xb9   : > { %4042 = vmatmul.mubr.msk.bf16.vlgmr.msra.gmra.mrb[0].mxu1 %vm256_vm2, %v4404_v44 }
  0xba   : > { %4046 = vmatpush3.bf16.msra.mxu1 %v839_v46  ;;  %4047 = vmatprep.mubr.msk.bf16.mxu1 %vm4443_vm0, %v4442_v0 }
  0xbb   : > { %4051 = vmatprep.subr.bf16.mxu1 %v4442_v0 }
  0xc0   : > { %3847 = vmatmul.mubr.msk.bf16.vlgmr.msra.gmra.mrb[0].mxu0 %vm256_vm2, %v4404_v44 }
  0xc1   : > { %842 = vmatpush1.bf16.msra.mxu0 %v833_v50  ;;  %873 = vmatprep.mubr.bf16.mxu0 %v4444_v1 }
  0xc2   : > { %3858 = vmatprep.subr.msk.bf16.mxu0 %vm260_vm1, %v947_v51 }
  0xc5   : > { %4048 = vmatmul.mubr.msk.bf16.vlgmr.msra.gmra.mrb[0].mxu1 %vm256_vm2, %v4405_v52 }
  0xc6   : > { %4052 = vmatpush3.bf16.msra.mxu1 %v958_v54  ;;  %4053 = vmatprep.mubr.msk.bf16.mxu1 %vm4443_vm0, %v4442_v0 }
  0xc7   : > { %4057 = vmatprep.subr.bf16.mxu1 %v4442_v0 }
  0xcc   : > { %3853 = vmatmul.mubr.msk.bf16.vlgmr.msra.gmra.mrb[0].mxu0 %vm256_vm2, %v4405_v52 }
  0xcd   : > { %961 = vmatpush1.bf16.msra.mxu0 %v952_v58  ;;  %992 = vmatprep.mubr.bf16.mxu0 %v4444_v1 }
  0xce   : > { %3864 = vmatprep.subr.msk.bf16.mxu0 %vm260_vm1, %v1066_v59 }
  0xd1   : > { %4054 = vmatmul.mubr.msk.bf16.vlgmr.msra.gmra.mrb[0].mxu1 %vm256_vm2, %v4406_v60 }
  0xd2   : > { %4058 = vmatpush3.bf16.msra.mxu1 %v1077_v62  ;;  %4059 = vmatprep.mubr.msk.bf16.mxu1 %vm4443_vm0, %v4442_v0 }
  0xd3   : > { %4063 = vmatprep.subr.bf16.mxu1 %v4442_v0 }
  0xd8   : > { %3859 = vmatmul.mubr.msk.bf16.vlgmr.msra.gmra.mrb[0].mxu0 %vm256_vm2, %v4406_v60 }
  0xd9   : > { %1080 = vmatpush1.bf16.msra.mxu0 %v1071_v4  ;;  %1111 = vmatprep.mubr.bf16.mxu0 %v4444_v1 }
  0xda   : > { %3870 = vmatprep.subr.msk.bf16.mxu0 %vm260_vm1, %v1185_v5 }
  0xdd   : > { %4060 = vmatmul.mubr.msk.bf16.vlgmr.msra.gmra.mrb[0].mxu1 %vm256_vm2, %v4407_v6 }
  0xde   : > { %4064 = vmatpush3.bf16.msra.mxu1 %v1196_v7  ;;  %4065 = vmatprep.mubr.msk.bf16.mxu1 %vm4443_vm0, %v4442_v0 }
  0xdf   : > { %4069 = vmatprep.subr.bf16.mxu1 %v4442_v0 }
  0xe4   : > { %3865 = vmatmul.mubr.msk.bf16.vlgmr.msra.gmra.mrb[0].mxu0 %vm256_vm2, %v4407_v6 }
  0xe5   : > { %1199 = vmatpush1.bf16.msra.mxu0 %v1190_v9  ;;  %1230 = vmatprep.mubr.bf16.mxu0 %v4444_v1 }
  0xe9   : > { %4066 = vmatmul.mubr.msk.bf16.vlgmr.msra.gmra.mrb[0].mxu1 %vm256_vm2, %v4408_v10 }
  0xea   : > { %4071 = vmatprep.mubr.msk.bf16.mxu1 %vm4443_vm0, %v4442_v0 }
  0xf0   : > { %3871 = vmatmul.mubr.msk.bf16.vlgmr.msra.gmra.mrb[0].mxu0 %vm256_vm2, %v4408_v10 }
  0xf1   : > { %1519 = vmatprep.mubr.bf16.mxu0 %v4444_v1 }
 0x1bc   : > { %v1275_v11 = vpop.f32.mrb[0].mxu1 }
 0x1bd   : > { %v1293_v13 = vrot.slane %v1275_v11, 4  ;;  %v4067_v14 = vpop.f32.mrb[1].mxu1 }
 0x1be   : > { %v1278_v15 = vpop.f32.mrb[2].mxu1 }
 0x1bf   : > { %v1299_v16 = vadd.f32 %v1293_v13, %v1275_v11  ;;  %v4068_v17 = vpop.f32.mrb[3].mxu1  ;;  %v1308_v20 = vrot.slane %v1278_v15, 4 }
 0x1c1   : > { %v1302_v19 = vadd.f32 %v1299_v16, %v1278_v15 }
 0x1c3   : > { %v1232_v21 = vpop.f32.mrb[0].mxu0  ;;  %v1314_v22 = vadd.f32 %v1308_v20, %v1302_v19 }
 0x1c4   : > { %v1291_v23 = vrot.slane %v1232_v21, 4  ;;  %v1234_v24 = vpop.f32.mrb[1].mxu0 }
 0x1c5   : > { %v1292_v26 = vrot.slane %v1234_v24, 4  ;;  %v1236_v27 = vpop.f32.mrb[2].mxu0  ;;  %v1333_v45 = vmul.f32 %v4641_v40, %v1314_v22 }
 0x1c6   : > { %v1297_v30 = vadd.f32 %v1291_v23, %v1232_v21  ;;  %v1238_v31 = vpop.f32.mrb[3].mxu0  ;;  %v1306_v35 = vrot.slane %v1236_v27, 4 }
 0x1c7   : > { %v1298_v33 = vadd.f32 %v1292_v26, %v1234_v24  ;;  %v1307_v38 = vrot.slane %v1238_v31, 4  ;;  %v1338_v49 = vsel %vm5074_vm11, %v1333_v45, 0.0 }
 0x1c8   : > { %v1300_v34 = vadd.f32 %v1297_v30, %v1236_v27 }
 0x1c9   : > { %v1301_v37 = vadd.f32 %v1298_v33, %v1238_v31 }
 0x1ca   : > { %v1312_v41 = vadd.f32 %v1306_v35, %v1300_v34 }
 0x1cb   : > { %v1313_v42 = vadd.f32 %v1307_v38, %v1301_v37 }
 0x1cc   : > { %v1331_v43 = vmul.f32 %v4637_v36, %v1312_v41 }
 0x1cd   : > { %v1332_v44 = vmul.f32 %v4639_v39, %v1313_v42 }
 0x1ce   : > { %v1334_v46 = vsel %vm260_vm1, %v1331_v43, 0.0 }
 0x1cf   : > { %v1335_v47 = vsel %vm260_vm1, %v1332_v44, 0.0 }
 0x1d0   : > { %v1336_v48 = vadd.f32 %v1335_v47, %v1334_v46 }
 0x1d2   : > { %v1339_v50 = vadd.f32 %v1338_v49, %v1336_v48 }
 0x1d4   : > { %1340 = vadd.xlane.f32.xlu0 %v1339_v50 }
 0x261   : > { %v1341_v51 = vpop.xlane.xlu0 %1340 }
 0x262   : > { %v1342_v52 = vmul.f32 0.0009765625, %v1341_v51 }
 0x264   : > { %v1344_v53 = vrot.slane %v1342_v52, 4 }
 0x266   : > { %v1346_v54 = vsel %vm260_vm1, %v1342_v52, %v1344_v53 }
 0x267   : > { %1349 = vperm.xlu1 %4395, %v1346_v54  }
 0x2e6   : > { %v1350_v55 = vpop.permute.xlu1 %1349 }
 0x2e7   : > { %v1352_v56 = vsub.f32 %v1232_v21, %v1350_v55  ;;  %v1353_v57 = vsub.f32 %v1234_v24, %v1350_v55  ;;  %v1354_v58 = vsub.f32 %v1275_v11, %v1350_v55  ;;  %v1355_v59 = vsub.f32 %v1236_v27, %v1350_v55 }
 0x2e8   : > { %v1356_v60 = vsub.f32 %v1238_v31, %v1350_v55  ;;  %v1357_v61 = vsub.f32 %v1278_v15, %v1350_v55 }
 0x2e9   : > { %v1358_v62 = vmul.f32 %v1352_v56, %v4637_v36  ;;  %v1359_v63 = vmul.f32 %v1353_v57, %v4639_v39  ;;  %v1360_v2 = vmul.f32 %v1354_v58, %v4641_v40  ;;  %v1361_v3 = vmul.f32 %v1355_v59, %v4637_v36 }
 0x2ea   : > { %v1362_v4 = vmul.f32 %v1356_v60, %v4639_v39  ;;  %v1363_v5 = vmul.f32 %v1357_v61, %v4641_v40 }
 0x2eb   : > { %v1364_v6 = vmul.f32 %v1358_v62, %v1358_v62  ;;  %v1365_v7 = vmul.f32 %v1359_v63, %v1359_v63  ;;  %v1366_v8 = vmul.f32 %v1360_v2, %v1360_v2  ;;  %v1367_v9 = vmul.f32 %v1361_v3, %v1361_v3 }
 0x2ec   : > { %v1368_v10 = vmul.f32 %v1362_v4, %v1362_v4  ;;  %v1369_v11 = vmul.f32 %v1363_v5, %v1363_v5 }
 0x2ed   : > { %v1373_v12 = vrot.slane %v1364_v6, 4  ;;  %v1374_v13 = vrot.slane %v1365_v7, 4  ;;  %v1375_v14 = vrot.slane %v1366_v8, 4  ;;  %v1388_v18 = vrot.slane %v1367_v9, 4 }
 0x2ee   : > { %v1389_v19 = vrot.slane %v1368_v10, 4  ;;  %v1390_v23 = vrot.slane %v1369_v11, 4 }
 0x2ef   : > { %v1379_v15 = vadd.f32 %v1373_v12, %v1364_v6  ;;  %v1380_v16 = vadd.f32 %v1374_v13, %v1365_v7  ;;  %v1381_v17 = vadd.f32 %v1375_v14, %v1366_v8  ;;  %v4409_v7 = vld [vmem:[%s5069_s2 + $0x8] sm:$0xff]  }
 0x2f1   : > { %v1382_v20 = vadd.f32 %v1379_v15, %v1367_v9  ;;  %v1383_v21 = vadd.f32 %v1380_v16, %v1368_v10  ;;  %v1384_v22 = vadd.f32 %v1381_v17, %v1369_v11  ;;  %v4410_v16 = vld [vmem:[%s5069_s2] sm:$0xff]  }
 0x2f3   : > { %v1394_v24 = vadd.f32 %v1388_v18, %v1382_v20  ;;  %v1395_v25 = vadd.f32 %v1389_v19, %v1383_v21  ;;  %v1396_v26 = vadd.f32 %v1390_v23, %v1384_v22 }
 0x2f5   : > { %v1397_v27 = vsel %vm260_vm1, %v1394_v24, 0.0  ;;  %v1398_v28 = vsel %vm260_vm1, %v1395_v25, 0.0  ;;  %v1400_v30 = vsel %vm5074_vm11, %v1396_v26, 0.0  ;;  %v4411_v26 = vld [vmem:[%s5069_s2 + $0x10] sm:$0xff]  }
 0x2f6   : > { %v1399_v29 = vadd.f32 %v1398_v28, %v1397_v27 }
 0x2f8   : > { %v1401_v31 = vadd.f32 %v1400_v30, %v1399_v29 }
 0x2fa   : > { %1402 = vadd.xlane.f32.xlu1 %v1401_v31 }
 0x30b   : > { %1468 = vrot.lane.b32.xlu1 %v4444_v1, %s4453_s7 }
 0x387   : > { %v1403_v32 = vpop.xlane.xlu1 %1402 }
 0x388   : > { %v1404_v33 = vmul.f32 0.0009765625, %v1403_v32 }
 0x38a   : > { %v1405_v34 = vadd.f32 1e-05, %v1404_v33  ;;  %v4412_v33 = vld [vmem:[%s5069_s2 + $0x18] sm:$0xff]  }
 0x38c   : > { %4427 = vrsqrt.f32 %v1405_v34 }
 0x396   : > { %v4428_v35 = vpop.eup %4427 }
 0x397   : > { %v1408_v37 = vrot.slane %v4428_v35, 4 }
 0x399   : > { %v1410_v38 = vsel %vm260_vm1, %v4428_v35, %v1408_v37 }
 0x39a   : > { %1413 = vperm.xlu0 %4396, %v1410_v38  }
 0x39e   : > { %1576 = vrot.lane.b32.xlu0 %v4444_v1, %s4454_s8 }
 0x419   : > { %v1414_v41 = vpop.permute.xlu0 %1413 }
 0x41a   : > { %v1416_v42 = vmul.f32 %v1414_v41, %v1358_v62  ;;  %v1417_v43 = vmul.f32 %v1414_v41, %v1359_v63  ;;  %v1418_v44 = vmul.f32 %v1414_v41, %v1360_v2  ;;  %v1419_v45 = vmul.f32 %v1414_v41, %v1361_v3  ;;  %v1469_v2 = vpop.permute.xlu1 %1468 }
 0x41b   : > { %v1420_v46 = vmul.f32 %v1414_v41, %v1362_v4  ;;  %v1421_v47 = vmul.f32 %v1414_v41, %v1363_v5  ;;  %v4413_v41 = vld [vmem:[%s5069_s2 + $0x20] sm:$0xff]  }
 0x41c   : > { %vm1422_vm13 = vcmp.ge.f32.partialorder %v1416_v42, 0.0  ;;  %vm1423_vm14 = vcmp.ge.f32.partialorder %v1417_v43, 0.0  ;;  %vm1424_vm15 = vcmp.ge.f32.partialorder %v1418_v44, 0.0  ;;  %vm1425_vm2 = vcmp.ge.f32.partialorder %v1419_v45, 0.0 }
 0x41d   : > { %vm1426_vm4 = vcmp.ge.f32.partialorder %v1420_v46, 0.0  ;;  %vm1427_vm7 = vcmp.ge.f32.partialorder %v1421_v47, 0.0  ;;  %v1428_v48 = vmul.f32 0.01, %v1416_v42  ;;  %v1429_v49 = vmul.f32 0.01, %v1417_v43  ;;  %v1577_v8 = vpop.permute.xlu0 %1576 }
 0x41e   : > { %v1430_v50 = vmul.f32 0.01, %v1418_v44  ;;  %v1431_v51 = vmul.f32 0.01, %v1419_v45  ;;  %v1432_v52 = vmul.f32 0.01, %v1420_v46 }
 0x41f   : > { %v1433_v53 = vmul.f32 0.01, %v1421_v47  ;;  %v4668_v54 = vsel %vm1422_vm13, %v1416_v42, %v1428_v48  ;;  %v4670_v55 = vsel %vm1423_vm14, %v1417_v43, %v1429_v49  ;;  %vm1584_vm13 = vcmask 154624  }
 0x420   : > { %v4672_v56 = vsel %vm1424_vm15, %v1418_v44, %v1430_v50  ;;  %v4674_v57 = vsel %vm1425_vm2, %v1419_v45, %v1431_v51  ;;  %v4676_v58 = vsel %vm1426_vm4, %v1420_v46, %v1432_v52  ;;  %vm1694_vm14 = vcmask 138240  }
 0x421   : > { %v4678_v59 = vsel %vm1427_vm7, %v1421_v47, %v1433_v53  ;;  %v4682_v60 = vpack.c.bf16 %v4674_v57, %v4668_v54  ;;  %v4686_v61 = vpack.c.bf16 %v4676_v58, %v4670_v55  ;;  %vm1810_vm15 = vcmask 7168   ;;  %v4414_v47 = vld [vmem:[%s5069_s2 + $0x28] sm:$0xff]   ;;  %v4415_v53 = vld [vmem:[%s5069_s2 + $0x30] sm:$0xff]  }
 0x422   : > { %v1445_v62 = vpack.c.bf16 %v4678_v59, %v4672_v56  ;;  %vm2137_vm2 = vcmask 908288  }
 0x423   : > { %1688 = vrot.lane.b32.xlu0 %v4682_v60, %s4455_s9  ;;  %1470 = vrot.lane.b32.xlu1 %v4682_v60, %s4453_s7 }
 0x424   : > { %1449 = vst.msk [vmem:[#allocation2 + $0x18] sm:$0xff] %vm1448_vm8, %v1445_v62 }
 0x427   : > { %1686 = vrot.lane.b32.xlu0 %v4444_v1, %s4455_s9  ;;  %1472 = vrot.lane.b32.xlu1 %v4686_v61, %s4453_s7 }
 0x42b   : > { %1804 = vrot.lane.b32.xlu0 %v4682_v60, %s4456_s10  ;;  %v4701_v63 = vld [vmem:[#allocation2 + $0x18] sm:$0xff] }
 0x42c   : > { %1474 = vrot.lane.b32.xlu1 %v4701_v63, %s4453_s7 }
 0x42f   : > { %1802 = vrot.lane.b32.xlu0 %v4444_v1, %s4456_s10 }
 0x430   : > { %1578 = vrot.lane.b32.xlu1 %v4682_v60, %s4454_s8 }
 0x433   : > { %2021 = vrot.lane.b32.xlu0 %v4686_v61, %s4445_s24 }
 0x434   : > { %1580 = vrot.lane.b32.xlu1 %v4686_v61, %s4454_s8 }
 0x437   : > { %2019 = vrot.lane.b32.xlu0 %v4682_v60, %s4445_s24 }
 0x438   : > { %1582 = vrot.lane.b32.xlu1 %v4701_v63, %s4454_s8 }
 0x43b   : > { %2135 = vrot.lane.b32.xlu0 %v4701_v63, %s4457_s11 }
 0x43c   : > { %1690 = vrot.lane.b32.xlu1 %v4686_v61, %s4455_s9 }
 0x43f   : > { %2246 = vrot.lane.b32.xlu0 %v4686_v61, %s4447_s26 }
 0x440   : > { %1692 = vrot.lane.b32.xlu1 %v4701_v63, %s4455_s9 }
 0x443   : > { %2244 = vrot.lane.b32.xlu0 %v4682_v60, %s4447_s26 }
 0x444   : > { %1806 = vrot.lane.b32.xlu1 %v4686_v61, %s4456_s10 }
 0x447   : > { %2360 = vrot.lane.b32.xlu0 %v4701_v63, %s4448_s27 }
 0x448   : > { %1808 = vrot.lane.b32.xlu1 %v4701_v63, %s4456_s10 }
 0x44c   : > { %2023 = vrot.lane.b32.xlu1 %v4701_v63, %s4445_s24 }
 0x450   : > { %2133 = vrot.lane.b32.xlu1 %v4686_v61, %s4457_s11 }
 0x454   : > { %2131 = vrot.lane.b32.xlu1 %v4682_v60, %s4457_s11 }
 0x458   : > { %2248 = vrot.lane.b32.xlu1 %v4701_v63, %s4447_s26 }
 0x45c   : > { %2358 = vrot.lane.b32.xlu1 %v4686_v61, %s4448_s27 }
 0x460   : > { %2356 = vrot.lane.b32.xlu1 %v4682_v60, %s4448_s27 }
 0x495   : > { %v1471_v3 = vpop.permute.xlu1 %1470  ;;  %v1689_v12 = vpop.permute.xlu0 %1688 }
 0x496   : > { %v1477_v6 = vsel %vm1476_vm9, %v1469_v2, %v1471_v3  ;;  %v4416_v2 = vld [vmem:[%s5069_s2 + $0x38] sm:$0xff]  }
 0x499   : > { %v1473_v4 = vpop.permute.xlu1 %1472  ;;  %v1687_v17 = vpop.permute.xlu0 %1686 }
 0x49a   : > { %v1478_v5 = vsel %vm1476_vm9, %v1471_v3, %v1473_v4  ;;  %v1695_v23 = vsel %vm1694_vm14, %v1687_v17, %v1689_v12 }
 0x49b   : > { %1487 = vmatprep.subr.bf16.mxu0 %v1478_v5  ;;  %v4417_v5 = vld [vmem:[%s5069_s2 + $0x40] sm:$0xff]  }
 0x49c   : > { %1488 = vmatpush1.bf16.msra.mxu0 %v1477_v6 }
 0x49d   : > { %v1805_v21 = vpop.permute.xlu0 %1804 }
 0x49e   : > { %v1475_v9 = vpop.permute.xlu1 %1474 }
 0x49f   : > { %v1479_v10 = vsel %vm1476_vm9, %v1473_v4, %v1475_v9  ;;  %3876 = vmatmul.mubr.msk.bf16.vlgmr.msra.gmra.mrb[4].mxu0 %vm1483_vm10, %v4409_v7 }
 0x4a0   : > { %4070 = vmatpush3.bf16.msra.mxu1 %v1479_v10  ;;  %1626 = vmatprep.mubr.bf16.mxu0 %v4444_v1 }
 0x4a1   : > { %4075 = vmatprep.subr.bf16.mxu1 %v4442_v0  ;;  %v1803_v27 = vpop.permute.xlu0 %1802 }
 0x4a2   : > { %v1579_v11 = vpop.permute.xlu1 %1578  ;;  %v1811_v30 = vsel %vm1810_vm15, %v1803_v27, %v1805_v21 }
 0x4a3   : > { %4072 = vmatmul.mubr.msk.bf16.vlgmr.msra.gmra.mrb[4].mxu1 %vm1483_vm10, %v4409_v7  ;;  %v1585_v15 = vsel %vm1584_vm13, %v1577_v8, %v1579_v11 }
 0x4a4   : > { %4077 = vmatprep.mubr.msk.bf16.mxu1 %vm4443_vm0, %v4442_v0 }
 0x4a5   : > { %v2022_v35 = vpop.permute.xlu0 %2021 }
 0x4a6   : > { %v1581_v13 = vpop.permute.xlu1 %1580 }
 0x4a7   : > { %v1586_v14 = vsel %vm1584_vm13, %v1579_v11, %v1581_v13 }
 0x4a8   : > { %1594 = vmatprep.subr.bf16.mxu0 %v1586_v14 }
 0x4a9   : > { %1595 = vmatpush1.bf16.msra.mxu0 %v1585_v15  ;;  %v2020_v38 = vpop.permute.xlu0 %2019 }
 0x4aa   : > { %v1583_v18 = vpop.permute.xlu1 %1582  ;;  %v2025_v43 = vsel %vm253_vm3, %v2020_v38, %v2022_v35 }
 0x4ab   : > { %v1587_v19 = vsel %vm1584_vm13, %v1581_v13, %v1583_v18 }
 0x4ac   : > { %3879 = vmatmul.mubr.msk.bf16.vlgmr.msra.gmra.mrb[4].mxu0 %vm1483_vm10, %v4410_v16  ;;  %4076 = vmatpush3.bf16.msra.mxu1 %v1587_v19 }
 0x4ad   : > { %4081 = vmatprep.subr.bf16.mxu1 %v4442_v0  ;;  %1736 = vmatprep.mubr.bf16.mxu0 %v4444_v1  ;;  %v2136_v44 = vpop.permute.xlu0 %2135 }
 0x4ae   : > { %v1691_v20 = vpop.permute.xlu1 %1690 }
 0x4af   : > { %4078 = vmatmul.mubr.msk.bf16.vlgmr.msra.gmra.mrb[4].mxu1 %vm1483_vm10, %v4410_v16  ;;  %v1696_v22 = vsel %vm1694_vm14, %v1689_v12, %v1691_v20 }
 0x4b0   : > { %1704 = vmatprep.subr.bf16.mxu0 %v1696_v22  ;;  %4083 = vmatprep.mubr.msk.bf16.mxu1 %vm4443_vm0, %v4442_v0 }
 0x4b1   : > { %1705 = vmatpush1.bf16.msra.mxu0 %v1695_v23  ;;  %v2247_v49 = vpop.permute.xlu0 %2246 }
 0x4b2   : > { %v1693_v24 = vpop.permute.xlu1 %1692 }
 0x4b3   : > { %v1697_v25 = vsel %vm1694_vm14, %v1691_v20, %v1693_v24 }
 0x4b4   : > { %4082 = vmatpush3.bf16.msra.mxu1 %v1697_v25 }
 0x4b5   : > { %4087 = vmatprep.subr.bf16.mxu1 %v4442_v0  ;;  %v2245_v52 = vpop.permute.xlu0 %2244 }
 0x4b6   : > { %v1807_v28 = vpop.permute.xlu1 %1806 }
 0x4b7   : > { %v1812_v29 = vsel %vm1810_vm15, %v1805_v21, %v1807_v28 }
 0x4b8   : > { %3884 = vmatmul.mubr.msk.bf16.vlgmr.msra.gmra.mrb[4].mxu0 %vm1483_vm10, %v4411_v26  ;;  %1820 = vmatprep.subr.bf16.mxu0 %v1812_v29 }
 0x4b9   : > { %1821 = vmatpush1.bf16.msra.mxu0 %v1811_v30  ;;  %1852 = vmatprep.mubr.bf16.mxu0 %v4444_v1  ;;  %v2361_v62 = vpop.permute.xlu0 %2360 }
 0x4ba   : > { %1921 = vmatprep.subr.bf16.mxu0 %v4686_v61  ;;  %v1809_v31 = vpop.permute.xlu1 %1808  ;;  %v2250_v61 = vsel %vm5076_vm5, %v2245_v52, %v2247_v49 }
 0x4bb   : > { %v1813_v32 = vsel %vm1810_vm15, %v1807_v28, %v1809_v31  ;;  %4084 = vmatmul.mubr.msk.bf16.vlgmr.msra.gmra.mrb[4].mxu1 %vm1483_vm10, %v4411_v26 }
 0x4bc   : > { %4088 = vmatpush3.bf16.msra.mxu1 %v1813_v32  ;;  %4089 = vmatprep.mubr.msk.bf16.mxu1 %vm4443_vm0, %v4442_v0 }
 0x4bd   : > { %4093 = vmatprep.subr.bf16.mxu1 %v4442_v0 }
 0x4be   : > { %v2024_v34 = vpop.permute.xlu1 %2023 }
 0x4bf   : > { %v2026_v37 = vsel %vm253_vm3, %v2022_v35, %v2024_v34 }
 0x4c2   : > { %v2134_v42 = vpop.permute.xlu1 %2133 }
 0x4c3   : > { %v2139_v45 = vsel %vm2137_vm2, %v2134_v42, %v2136_v44 }
 0x4c4   : > { %3889 = vmatmul.mubr.msk.bf16.vlgmr.msra.gmra.mrb[4].mxu0 %vm1483_vm10, %v4412_v33 }
 0x4c5   : > { %1922 = vmatpush1.bf16.msra.mxu0 %v4682_v60  ;;  %1953 = vmatprep.mubr.bf16.mxu0 %v4444_v1 }
 0x4c6   : > { %2033 = vmatprep.subr.bf16.mxu0 %v2026_v37  ;;  %v2132_v46 = vpop.permute.xlu1 %2131 }
 0x4c7   : > { %4090 = vmatmul.mubr.msk.bf16.vlgmr.msra.gmra.mrb[4].mxu1 %vm1483_vm10, %v4412_v33  ;;  %v2138_v50 = vsel %vm2137_vm2, %v2132_v46, %v2134_v42 }
 0x4c8   : > { %4094 = vmatpush3.bf16.msra.mxu1 %v4701_v63  ;;  %4095 = vmatprep.mubr.msk.bf16.mxu1 %vm4443_vm0, %v4442_v0  ;;  %v4826_v63 = vld [vmem:[#allocation2] sm:$0xff] }
 0x4c9   : > { %4099 = vmatprep.subr.bf16.mxu1 %v4442_v0 }
 0x4ca   : > { %v2249_v48 = vpop.permute.xlu1 %2248 }
 0x4cb   : > { %v2251_v51 = vsel %vm5076_vm5, %v2247_v49, %v2249_v48 }
 0x4ce   : > { %v2359_v60 = vpop.permute.xlu1 %2358 }
 0x4d0   : > { %3894 = vmatmul.mubr.msk.bf16.vlgmr.msra.gmra.mrb[4].mxu0 %vm1483_vm10, %v4413_v41 }
 0x4d1   : > { %2034 = vmatpush1.bf16.msra.mxu0 %v2025_v43  ;;  %2065 = vmatprep.mubr.bf16.mxu0 %v4444_v1 }
 0x4d2   : > { %2146 = vmatprep.subr.bf16.mxu0 %v2139_v45  ;;  %v2357_v3 = vpop.permute.xlu1 %2356 }
 0x4d3   : > { %4096 = vmatmul.mubr.msk.bf16.vlgmr.msra.gmra.mrb[4].mxu1 %vm1483_vm10, %v4413_v41  ;;  %v2362_v4 = vsel %vm5075_vm6, %v2357_v3, %v2359_v60 }
 0x4d4   : > { %4100 = vmatpush3.bf16.msra.mxu1 %v2024_v34  ;;  %4101 = vmatprep.mubr.msk.bf16.mxu1 %vm4443_vm0, %v4442_v0 }
 0x4d5   : > { %4105 = vmatprep.subr.bf16.mxu1 %v4442_v0 }
 0x4dc   : > { %3899 = vmatmul.mubr.msk.bf16.vlgmr.msra.gmra.mrb[4].mxu0 %vm1483_vm10, %v4414_v47 }
 0x4dd   : > { %2147 = vmatpush1.bf16.msra.mxu0 %v2138_v50  ;;  %2178 = vmatprep.mubr.bf16.mxu0 %v4444_v1  ;;  %v2363_v1 = vsel %vm5075_vm6, %v2359_v60, %v2361_v62 }
 0x4de   : > { %2258 = vmatprep.subr.bf16.mxu0 %v2251_v51 }
 0x4df   : > { %4102 = vmatmul.mubr.msk.bf16.vlgmr.msra.gmra.mrb[4].mxu1 %vm1483_vm10, %v4414_v47 }
 0x4e0   : > { %4106 = vmatpush3.bf16.msra.mxu1 %v2136_v44  ;;  %4107 = vmatprep.mubr.msk.bf16.mxu1 %vm4443_vm0, %v4442_v0 }
 0x4e1   : > { %4111 = vmatprep.subr.bf16.mxu1 %v4442_v0 }
 0x4e8   : > { %3904 = vmatmul.mubr.msk.bf16.vlgmr.msra.gmra.mrb[4].mxu0 %vm1483_vm10, %v4415_v53 }
 0x4e9   : > { %2259 = vmatpush1.bf16.msra.mxu0 %v2250_v61  ;;  %2290 = vmatprep.mubr.bf16.mxu0 %v4826_v63 }
 0x4ea   : > { %2370 = vmatprep.subr.bf16.mxu0 %v2363_v1 }
 0x4eb   : > { %4108 = vmatmul.mubr.msk.bf16.vlgmr.msra.gmra.mrb[4].mxu1 %vm1483_vm10, %v4415_v53 }
 0x4ec   : > { %4112 = vmatpush3.bf16.msra.mxu1 %v2249_v48  ;;  %4113 = vmatprep.mubr.msk.bf16.mxu1 %vm4443_vm0, %v4442_v0 }
 0x4ed   : > { %4117 = vmatprep.subr.bf16.mxu1 %v4442_v0 }
 0x4f4   : > { %3909 = vmatmul.mubr.msk.bf16.vlgmr.msra.gmra.mrb[4].mxu0 %vm1483_vm10, %v4416_v2 }
 0x4f5   : > { %2371 = vmatpush1.bf16.msra.mxu0 %v2362_v4  ;;  %2402 = vmatprep.mubr.bf16.mxu0 %v4826_v63 }
 0x4f7   : > { %4114 = vmatmul.mubr.msk.bf16.vlgmr.msra.gmra.mrb[4].mxu1 %vm1483_vm10, %v4416_v2 }
 0x4f8   : > { %4118 = vmatpush3.bf16.msra.mxu1 %v2361_v62  ;;  %4119 = vmatprep.mubr.msk.bf16.mxu1 %vm4443_vm0, %v4442_v0 }
 0x4f9   : > { %4123 = vmatprep.subr.bf16.mxu1 %v4442_v0 }
 0x500   : > { %3914 = vmatmul.mubr.msk.bf16.vlgmr.msra.gmra.mrb[4].mxu0 %vm1483_vm10, %v4417_v5 }
 0x501   : > { %2670 = vmatprep.mubr.bf16.mxu0 %v4826_v63 }
 0x503   : > { %4120 = vmatmul.mubr.msk.bf16.vlgmr.msra.gmra.mrb[4].mxu1 %vm1483_vm10, %v4417_v5 }
 0x504   : > { %4125 = vmatprep.mubr.msk.bf16.mxu1 %vm4443_vm0, %v4442_v0 }
 0x5d3   : > { %v2404_v6 = vpop.f32.mrb[4].mxu0 }
 0x5d4   : > { %v2463_v7 = vrot.slane %v2404_v6, 4  ;;  %v2406_v8 = vpop.f32.mrb[5].mxu0 }
 0x5d5   : > { %v2464_v9 = vrot.slane %v2406_v8, 4  ;;  %v2408_v10 = vpop.f32.mrb[6].mxu0 }
 0x5d6   : > { %v2469_v11 = vadd.f32 %v2463_v7, %v2404_v6  ;;  %v2410_v12 = vpop.f32.mrb[7].mxu0  ;;  %v2447_v13 = vpop.f32.mrb[4].mxu1  ;;  %v2478_v18 = vrot.slane %v2408_v10, 4 }
 0x5d7   : > { %v2470_v14 = vadd.f32 %v2464_v9, %v2406_v8  ;;  %v2465_v15 = vrot.slane %v2447_v13, 4  ;;  %v4121_v16 = vpop.f32.mrb[5].mxu1  ;;  %v2479_v21 = vrot.slane %v2410_v12, 4 }
 0x5d8   : > { %v2472_v17 = vadd.f32 %v2469_v11, %v2408_v10  ;;  %v2450_v19 = vpop.f32.mrb[6].mxu1 }
 0x5d9   : > { %v2473_v20 = vadd.f32 %v2470_v14, %v2410_v12  ;;  %v2471_v22 = vadd.f32 %v2465_v15, %v2447_v13  ;;  %v4122_v23 = vpop.f32.mrb[7].mxu1  ;;  %v2480_v27 = vrot.slane %v2450_v19, 4 }
 0x5da   : > { %v2484_v24 = vadd.f32 %v2478_v18, %v2472_v17 }
 0x5db   : > { %v2485_v25 = vadd.f32 %v2479_v21, %v2473_v20  ;;  %v2474_v26 = vadd.f32 %v2471_v22, %v2450_v19 }
 0x5dc   : > { %v2487_v28 = vmul.f32 %v2484_v24, %v4637_v36 }
 0x5dd   : > { %v2486_v29 = vadd.f32 %v2480_v27, %v2474_v26  ;;  %v2488_v30 = vmul.f32 %v2485_v25, %v4639_v39 }
 0x5de   : > { %v2490_v31 = vsel %vm260_vm1, %v2487_v28, 0.0 }
 0x5df   : > { %v2489_v32 = vmul.f32 %v2486_v29, %v4641_v40  ;;  %v2491_v33 = vsel %vm260_vm1, %v2488_v30, 0.0 }
 0x5e0   : > { %v2492_v34 = vadd.f32 %v2491_v33, %v2490_v31 }
 0x5e1   : > { %v2493_v35 = vsel %vm5074_vm11, %v2489_v32, 0.0 }
 0x5e2   : > { %v2494_v37 = vadd.f32 %v2493_v35, %v2492_v34 }
 0x5e4   : > { %2495 = vadd.xlane.f32.xlu0 %v2494_v37 }
 0x671   : > { %v2496_v38 = vpop.xlane.xlu0 %2495 }
 0x672   : > { %v2497_v41 = vmul.f32 0.0009765625, %v2496_v38 }
 0x674   : > { %v2499_v42 = vrot.slane %v2497_v41, 4 }
 0x676   : > { %v2501_v43 = vsel %vm260_vm1, %v2497_v41, %v2499_v42 }
 0x677   : > { %2504 = vperm.xlu1 %4395, %v2501_v43  }
 0x6f6   : > { %v2505_v44 = vpop.permute.xlu1 %2504 }
 0x6f7   : > { %v2507_v45 = vsub.f32 %v2404_v6, %v2505_v44  ;;  %v2508_v46 = vsub.f32 %v2406_v8, %v2505_v44  ;;  %v2509_v47 = vsub.f32 %v2447_v13, %v2505_v44  ;;  %v2510_v48 = vsub.f32 %v2408_v10, %v2505_v44 }
 0x6f8   : > { %v2511_v49 = vsub.f32 %v2410_v12, %v2505_v44  ;;  %v2512_v50 = vsub.f32 %v2450_v19, %v2505_v44 }
 0x6f9   : > { %v2513_v51 = vmul.f32 %v2507_v45, %v4637_v36  ;;  %v2514_v52 = vmul.f32 %v2508_v46, %v4639_v39  ;;  %v2515_v53 = vmul.f32 %v2509_v47, %v4641_v40  ;;  %v2516_v60 = vmul.f32 %v2510_v48, %v4637_v36 }
 0x6fa   : > { %v2517_v61 = vmul.f32 %v2511_v49, %v4639_v39  ;;  %v2518_v62 = vmul.f32 %v2512_v50, %v4641_v40 }
 0x6fb   : > { %v2519_v1 = vmul.f32 %v2513_v51, %v2513_v51  ;;  %v2520_v2 = vmul.f32 %v2514_v52, %v2514_v52  ;;  %v2521_v3 = vmul.f32 %v2515_v53, %v2515_v53  ;;  %v2522_v4 = vmul.f32 %v2516_v60, %v2516_v60 }
 0x6fc   : > { %v2523_v5 = vmul.f32 %v2517_v61, %v2517_v61  ;;  %v2524_v6 = vmul.f32 %v2518_v62, %v2518_v62 }
 0x6fd   : > { %v2528_v7 = vrot.slane %v2519_v1, 4  ;;  %v2529_v8 = vrot.slane %v2520_v2, 4  ;;  %v2530_v9 = vrot.slane %v2521_v3, 4  ;;  %v2543_v13 = vrot.slane %v2522_v4, 4 }
 0x6fe   : > { %v2544_v14 = vrot.slane %v2523_v5, 4  ;;  %v2545_v18 = vrot.slane %v2524_v6, 4 }
 0x6ff   : > { %v2534_v10 = vadd.f32 %v2528_v7, %v2519_v1  ;;  %v2535_v11 = vadd.f32 %v2529_v8, %v2520_v2  ;;  %v2536_v12 = vadd.f32 %v2530_v9, %v2521_v3  ;;  %v4418_v8 = vld [vmem:[%s5070_s3 + $0x8] sm:$0xff]  }
 0x701   : > { %v2537_v15 = vadd.f32 %v2534_v10, %v2522_v4  ;;  %v2538_v16 = vadd.f32 %v2535_v11, %v2523_v5  ;;  %v2539_v17 = vadd.f32 %v2536_v12, %v2524_v6 }
 0x703   : > { %v2549_v19 = vadd.f32 %v2543_v13, %v2537_v15  ;;  %v2550_v20 = vadd.f32 %v2544_v14, %v2538_v16  ;;  %v2551_v21 = vadd.f32 %v2545_v18, %v2539_v17  ;;  %v4419_v18 = vld [vmem:[%s5070_s3] sm:$0xff]  }
 0x705   : > { %v2552_v22 = vsel %vm260_vm1, %v2549_v19, 0.0  ;;  %v2553_v23 = vsel %vm260_vm1, %v2550_v20, 0.0  ;;  %v2555_v25 = vsel %vm5074_vm11, %v2551_v21, 0.0 }
 0x706   : > { %v2554_v24 = vadd.f32 %v2553_v23, %v2552_v22 }
 0x708   : > { %v2556_v26 = vadd.f32 %v2555_v25, %v2554_v24 }
 0x70a   : > { %2557 = vadd.xlane.f32.xlu1 %v2556_v26 }
 0x797   : > { %v2558_v27 = vpop.xlane.xlu1 %2557 }
 0x798   : > { %v2559_v28 = vmul.f32 0.0009765625, %v2558_v27 }
 0x79a   : > { %v2560_v29 = vadd.f32 1e-05, %v2559_v28  ;;  %v4420_v28 = vld [vmem:[%s5070_s3 + $0x10] sm:$0xff]  }
 0x79c   : > { %4429 = vrsqrt.f32 %v2560_v29 }
 0x7a6   : > { %v4430_v30 = vpop.eup %4429 }
 0x7a7   : > { %v2563_v31 = vrot.slane %v4430_v30, 4 }
 0x7a9   : > { %v2565_v32 = vsel %vm260_vm1, %v4430_v30, %v2563_v31 }
 0x7aa   : > { %2568 = vperm.xlu0 %4396, %v2565_v32  }
 0x829   : > { %v2569_v33 = vpop.permute.xlu0 %2568 }
 0x82a   : > { %v2571_v34 = vmul.f32 %v2569_v33, %v2513_v51  ;;  %v2572_v35 = vmul.f32 %v2569_v33, %v2514_v52  ;;  %v2573_v37 = vmul.f32 %v2569_v33, %v2515_v53  ;;  %v2574_v38 = vmul.f32 %v2569_v33, %v2516_v60 }
 0x82b   : > { %v2575_v41 = vmul.f32 %v2569_v33, %v2517_v61  ;;  %v2576_v42 = vmul.f32 %v2569_v33, %v2518_v62 }
 0x82c   : > { %vm2577_vm4 = vcmp.ge.f32.partialorder %v2571_v34, 0.0  ;;  %vm2578_vm7 = vcmp.ge.f32.partialorder %v2572_v35, 0.0  ;;  %vm2579_vm12 = vcmp.ge.f32.partialorder %v2573_v37, 0.0  ;;  %vm2580_vm11 = vcmp.ge.f32.partialorder %v2574_v38, 0.0 }
 0x82d   : > { %vm2581_vm6 = vcmp.ge.f32.partialorder %v2575_v41, 0.0  ;;  %vm2582_vm5 = vcmp.ge.f32.partialorder %v2576_v42, 0.0  ;;  %v2583_v43 = vmul.f32 0.01, %v2571_v34  ;;  %v2584_v44 = vmul.f32 0.01, %v2572_v35 }
 0x82e   : > { %v2585_v45 = vmul.f32 0.01, %v2573_v37  ;;  %v2586_v46 = vmul.f32 0.01, %v2574_v38  ;;  %v2587_v47 = vmul.f32 0.01, %v2575_v41 }
 0x82f   : > { %v2588_v48 = vmul.f32 0.01, %v2576_v42  ;;  %v2589_v49 = vsel %vm2577_vm4, %v2571_v34, %v2583_v43  ;;  %v2590_v50 = vsel %vm2578_vm7, %v2572_v35, %v2584_v44  ;;  %v4421_v34 = vld [vmem:[%s5070_s3 + $0x18] sm:$0xff]  }
 0x830   : > { %v2591_v51 = vsel %vm2579_vm12, %v2573_v37, %v2585_v45  ;;  %v2592_v52 = vsel %vm2580_vm11, %v2574_v38, %v2586_v46  ;;  %v2593_v53 = vsel %vm2581_vm6, %v2575_v41, %v2587_v47  ;;  %vm5079_vm6 = vcmask 891904  }
 0x831   : > { %v2594_v60 = vsel %vm2582_vm5, %v2576_v42, %v2588_v48  ;;  %v4868_v61 = vpack.c.bf16 %v2592_v52, %v2589_v49  ;;  %v4870_v62 = vpack.c.bf16 %v2593_v53, %v2590_v50  ;;  %v4422_v42 = vld [vmem:[%s5070_s3 + $0x20] sm:$0xff]   ;;  %v4423_v48 = vld [vmem:[%s5070_s3 + $0x28] sm:$0xff]   ;;  %vm5080_vm11 = vmmov %vm5079_vm6 }
 0x832   : > { %v2599_v1 = vpack.c.bf16 %v2594_v60, %v2591_v51  ;;  %v4424_v60 = vld [vmem:[%s5070_s3 + $0x30] sm:$0xff]  }
 0x833   : > { %2625 = vrot.lane.b32.xlu0 %v4870_v62, %s4453_s7  ;;  %2623 = vrot.lane.b32.xlu1 %v4868_v61, %s4453_s7 }
 0x834   : > { %2602 = vst.msk [vmem:[#allocation3 + $0x18] sm:$0xff] %vm1448_vm8, %v2599_v1 }
 0x837   : > { %2621 = vrot.lane.b32.xlu0 %v4826_v63, %s4453_s7 }
 0x83b   : > { %v4879_v2 = vld [vmem:[#allocation3 + $0x18] sm:$0xff]  ;;  %2729 = vrot.lane.b32.xlu0 %v4868_v61, %s4454_s8 }
 0x83c   : > { %2627 = vrot.lane.b32.xlu1 %v4879_v2, %s4453_s7 }
 0x83f   : > { %2727 = vrot.lane.b32.xlu0 %v4826_v63, %s4454_s8 }
 0x840   : > { %2731 = vrot.lane.b32.xlu1 %v4870_v62, %s4454_s8 }
 0x843   : > { %2838 = vrot.lane.b32.xlu0 %v4868_v61, %s4455_s9 }
 0x844   : > { %2733 = vrot.lane.b32.xlu1 %v4879_v2, %s4454_s8 }
 0x847   : > { %2836 = vrot.lane.b32.xlu0 %v4826_v63, %s4455_s9 }
 0x848   : > { %2840 = vrot.lane.b32.xlu1 %v4870_v62, %s4455_s9 }
 0x84b   : > { %2953 = vrot.lane.b32.xlu0 %v4868_v61, %s4456_s10 }
 0x84c   : > { %2842 = vrot.lane.b32.xlu1 %v4879_v2, %s4455_s9 }
 0x84f   : > { %2951 = vrot.lane.b32.xlu0 %v4826_v63, %s4456_s10 }
 0x850   : > { %2955 = vrot.lane.b32.xlu1 %v4870_v62, %s4456_s10 }
 0x853   : > { %3169 = vrot.lane.b32.xlu0 %v4870_v62, %s4445_s24 }
 0x854   : > { %2957 = vrot.lane.b32.xlu1 %v4879_v2, %s4456_s10 }
 0x857   : > { %3167 = vrot.lane.b32.xlu0 %v4868_v61, %s4445_s24 }
 0x858   : > { %3171 = vrot.lane.b32.xlu1 %v4879_v2, %s4445_s24 }
 0x85b   : > { %3283 = vrot.lane.b32.xlu0 %v4879_v2, %s4457_s11 }
 0x85c   : > { %3281 = vrot.lane.b32.xlu1 %v4870_v62, %s4457_s11 }
 0x85f   : > { %3393 = vrot.lane.b32.xlu0 %v4870_v62, %s4447_s26 }
 0x860   : > { %3279 = vrot.lane.b32.xlu1 %v4868_v61, %s4457_s11 }
 0x863   : > { %3391 = vrot.lane.b32.xlu0 %v4868_v61, %s4447_s26 }
 0x864   : > { %3395 = vrot.lane.b32.xlu1 %v4879_v2, %s4447_s26 }
 0x867   : > { %3507 = vrot.lane.b32.xlu0 %v4879_v2, %s4448_s27 }
 0x868   : > { %3505 = vrot.lane.b32.xlu1 %v4870_v62, %s4448_s27 }
 0x86c   : > { %3503 = vrot.lane.b32.xlu1 %v4868_v61, %s4448_s27 }
 0x8a5   : > { %v2626_v3 = vpop.permute.xlu0 %2625  ;;  %v2624_v4 = vpop.permute.xlu1 %2623 }
 0x8a6   : > { %v2630_v5 = vsel %vm1476_vm9, %v2624_v4, %v2626_v3 }
 0x8a7   : > { %2638 = vmatprep.subr.bf16.mxu0 %v2630_v5 }
 0x8a9   : > { %v2622_v6 = vpop.permute.xlu0 %2621 }
 0x8aa   : > { %v2629_v7 = vsel %vm1476_vm9, %v2622_v6, %v2624_v4  ;;  %v4426_v6 = vld [vmem:[%s5070_s3 + $0x40] sm:$0xff]  }
 0x8ab   : > { %2639 = vmatpush1.bf16.msra.mxu0 %v2629_v7 }
 0x8ad   : > { %v2730_v9 = vpop.permute.xlu0 %2729 }
 0x8ae   : > { %v2628_v10 = vpop.permute.xlu1 %2627  ;;  %3919 = vmatmul.mubr.msk.bf16.vlgmr.msra.gmra.mrb[8].mxu0 %vm1483_vm10, %v4418_v8 }
 0x8af   : > { %v2631_v11 = vsel %vm1476_vm9, %v2626_v3, %v2628_v10  ;;  %2776 = vmatprep.mubr.bf16.mxu0 %v4826_v63  ;;  %v4425_v3 = vld [vmem:[%s5070_s3 + $0x38] sm:$0xff]  }
 0x8b0   : > { %4124 = vmatpush3.bf16.msra.mxu1 %v2631_v11 }
 0x8b1   : > { %v2728_v12 = vpop.permute.xlu0 %2727  ;;  %4129 = vmatprep.subr.bf16.mxu1 %v4442_v0 }
 0x8b2   : > { %v2732_v13 = vpop.permute.xlu1 %2731  ;;  %v2735_v14 = vsel %vm1584_vm13, %v2728_v12, %v2730_v9 }
 0x8b3   : > { %4126 = vmatmul.mubr.msk.bf16.vlgmr.msra.gmra.mrb[8].mxu1 %vm1483_vm10, %v4418_v8  ;;  %v2736_v15 = vsel %vm1584_vm13, %v2730_v9, %v2732_v13 }
 0x8b4   : > { %2744 = vmatprep.subr.bf16.mxu0 %v2736_v15  ;;  %4131 = vmatprep.mubr.msk.bf16.mxu1 %vm4443_vm0, %v4442_v0 }
 0x8b5   : > { %2745 = vmatpush1.bf16.msra.mxu0 %v2735_v14  ;;  %v2839_v16 = vpop.permute.xlu0 %2838 }
 0x8b6   : > { %v2734_v17 = vpop.permute.xlu1 %2733 }
 0x8b7   : > { %v2737_v19 = vsel %vm1584_vm13, %v2732_v13, %v2734_v17 }
 0x8b8   : > { %4130 = vmatpush3.bf16.msra.mxu1 %v2737_v19 }
 0x8b9   : > { %v2837_v20 = vpop.permute.xlu0 %2836  ;;  %4135 = vmatprep.subr.bf16.mxu1 %v4442_v0 }
 0x8ba   : > { %v2841_v21 = vpop.permute.xlu1 %2840  ;;  %v2844_v22 = vsel %vm1694_vm14, %v2837_v20, %v2839_v16  ;;  %3922 = vmatmul.mubr.msk.bf16.vlgmr.msra.gmra.mrb[8].mxu0 %vm1483_vm10, %v4419_v18 }
 0x8bb   : > { %v2845_v23 = vsel %vm1694_vm14, %v2839_v16, %v2841_v21  ;;  %2885 = vmatprep.mubr.bf16.mxu0 %v4826_v63 }
 0x8bc   : > { %2853 = vmatprep.subr.bf16.mxu0 %v2845_v23 }
 0x8bd   : > { %2854 = vmatpush1.bf16.msra.mxu0 %v2844_v22  ;;  %v2954_v24 = vpop.permute.xlu0 %2953 }
 0x8be   : > { %v2843_v25 = vpop.permute.xlu1 %2842 }
 0x8bf   : > { %v2846_v26 = vsel %vm1694_vm14, %v2841_v21, %v2843_v25  ;;  %4132 = vmatmul.mubr.msk.bf16.vlgmr.msra.gmra.mrb[8].mxu1 %vm1483_vm10, %v4419_v18 }
 0x8c0   : > { %4136 = vmatpush3.bf16.msra.mxu1 %v2846_v26  ;;  %4137 = vmatprep.mubr.msk.bf16.mxu1 %vm4443_vm0, %v4442_v0 }
 0x8c1   : > { %4141 = vmatprep.subr.bf16.mxu1 %v4442_v0  ;;  %v2952_v30 = vpop.permute.xlu0 %2951 }
 0x8c2   : > { %v2956_v27 = vpop.permute.xlu1 %2955  ;;  %v2959_v31 = vsel %vm1810_vm15, %v2952_v30, %v2954_v24 }
 0x8c3   : > { %v2960_v29 = vsel %vm1810_vm15, %v2954_v24, %v2956_v27 }
 0x8c4   : > { %2968 = vmatprep.subr.bf16.mxu0 %v2960_v29 }
 0x8c5   : > { %v3170_v35 = vpop.permute.xlu0 %3169 }
 0x8c6   : > { %3927 = vmatmul.mubr.msk.bf16.vlgmr.msra.gmra.mrb[8].mxu0 %vm1483_vm10, %v4420_v28  ;;  %v2958_v32 = vpop.permute.xlu1 %2957 }
 0x8c7   : > { %2969 = vmatpush1.bf16.msra.mxu0 %v2959_v31  ;;  %3000 = vmatprep.mubr.bf16.mxu0 %v4826_v63  ;;  %v2961_v33 = vsel %vm1810_vm15, %v2956_v27, %v2958_v32 }
 0x8c8   : > { %3069 = vmatprep.subr.bf16.mxu0 %v4870_v62 }
 0x8c9   : > { %v3168_v41 = vpop.permute.xlu0 %3167 }
 0x8ca   : > { %v3172_v37 = vpop.permute.xlu1 %3171  ;;  %v3173_v45 = vsel %vm253_vm3, %v3168_v41, %v3170_v35 }
 0x8cb   : > { %4138 = vmatmul.mubr.msk.bf16.vlgmr.msra.gmra.mrb[8].mxu1 %vm1483_vm10, %v4420_v28  ;;  %v3174_v38 = vsel %vm253_vm3, %v3170_v35, %v3172_v37  ;;  %vm5077_vm3 = vcmask 900096  }
 0x8cc   : > { %4142 = vmatpush3.bf16.msra.mxu1 %v2961_v33  ;;  %4143 = vmatprep.mubr.msk.bf16.mxu1 %vm4443_vm0, %v4442_v0  ;;  %vm5078_vm5 = vmmov %vm5077_vm3 }
 0x8cd   : > { %4147 = vmatprep.subr.bf16.mxu1 %v4442_v0  ;;  %v3284_v44 = vpop.permute.xlu0 %3283 }
 0x8ce   : > { %v3282_v43 = vpop.permute.xlu1 %3281 }
 0x8cf   : > { %v3286_v46 = vsel %vm2137_vm2, %v3282_v43, %v3284_v44 }
 0x8d1   : > { %v3394_v49 = vpop.permute.xlu0 %3393 }
 0x8d2   : > { %3932 = vmatmul.mubr.msk.bf16.vlgmr.msra.gmra.mrb[8].mxu0 %vm1483_vm10, %v4421_v34  ;;  %v3280_v47 = vpop.permute.xlu1 %3279 }
 0x8d3   : > { %3070 = vmatpush1.bf16.msra.mxu0 %v4868_v61  ;;  %3101 = vmatprep.mubr.bf16.mxu0 %v4826_v63  ;;  %v3285_v51 = vsel %vm2137_vm2, %v3280_v47, %v3282_v43  ;;  %vm5083_vm2 = vcmask 1047808  }
 0x8d4   : > { %3181 = vmatprep.subr.bf16.mxu0 %v3174_v38  ;;  %vm5084_vm4 = vmmov %vm5083_vm2 }
 0x8d5   : > { %v3392_v53 = vpop.permute.xlu0 %3391 }
 0x8d6   : > { %v3396_v50 = vpop.permute.xlu1 %3395  ;;  %v3397_v1 = vsel %vm5078_vm5, %v3392_v53, %v3394_v49 }
 0x8d7   : > { %4144 = vmatmul.mubr.msk.bf16.vlgmr.msra.gmra.mrb[8].mxu1 %vm1483_vm10, %v4421_v34  ;;  %v3398_v52 = vsel %vm5077_vm3, %v3394_v49, %v3396_v50 }
 0x8d8   : > { %4148 = vmatpush3.bf16.msra.mxu1 %v4879_v2  ;;  %4149 = vmatprep.mubr.msk.bf16.mxu1 %vm4443_vm0, %v4442_v0 }
 0x8d9   : > { %4153 = vmatprep.subr.bf16.mxu1 %v4442_v0  ;;  %v3508_v62 = vpop.permute.xlu0 %3507 }
 0x8da   : > { %v3506_v61 = vpop.permute.xlu1 %3505 }
 0x8db   : > { %v3510_v2 = vsel %vm5079_vm6, %v3506_v61, %v3508_v62 }
 0x8de   : > { %3937 = vmatmul.mubr.msk.bf16.vlgmr.msra.gmra.mrb[8].mxu0 %vm1483_vm10, %v4422_v42  ;;  %v3504_v4 = vpop.permute.xlu1 %3503 }
 0x8df   : > { %3182 = vmatpush1.bf16.msra.mxu0 %v3173_v45  ;;  %3213 = vmatprep.mubr.bf16.mxu0 %v4826_v63  ;;  %v3509_v5 = vsel %vm5080_vm11, %v3504_v4, %v3506_v61 }
 0x8e0   : > { %3293 = vmatprep.subr.bf16.mxu0 %v3286_v46 }
 0x8e3   : > { %4150 = vmatmul.mubr.msk.bf16.vlgmr.msra.gmra.mrb[8].mxu1 %vm1483_vm10, %v4422_v42 }
 0x8e4   : > { %4154 = vmatpush3.bf16.msra.mxu1 %v3172_v37  ;;  %4155 = vmatprep.mubr.msk.bf16.mxu1 %vm4443_vm0, %v4442_v0 }
 0x8e5   : > { %4159 = vmatprep.subr.bf16.mxu1 %v4442_v0 }
 0x8ea   : > { %3942 = vmatmul.mubr.msk.bf16.vlgmr.msra.gmra.mrb[8].mxu0 %vm1483_vm10, %v4423_v48 }
 0x8eb   : > { %3294 = vmatpush1.bf16.msra.mxu0 %v3285_v51  ;;  %3325 = vmatprep.mubr.bf16.mxu0 %v4826_v63 }
 0x8ec   : > { %3405 = vmatprep.subr.bf16.mxu0 %v3398_v52 }
 0x8ef   : > { %4156 = vmatmul.mubr.msk.bf16.vlgmr.msra.gmra.mrb[8].mxu1 %vm1483_vm10, %v4423_v48 }
 0x8f0   : > { %4160 = vmatpush3.bf16.msra.mxu1 %v3284_v44  ;;  %4161 = vmatprep.mubr.msk.bf16.mxu1 %vm4443_vm0, %v4442_v0 }
 0x8f1   : > { %4165 = vmatprep.subr.bf16.mxu1 %v4442_v0 }
 0x8f6   : > { %3947 = vmatmul.mubr.msk.bf16.vlgmr.msra.gmra.mrb[8].mxu0 %vm1483_vm10, %v4424_v60 }
 0x8f7   : > { %3406 = vmatpush1.bf16.msra.mxu0 %v3397_v1  ;;  %3437 = vmatprep.mubr.bf16.mxu0 %v4826_v63 }
 0x8f8   : > { %3517 = vmatprep.subr.bf16.mxu0 %v3510_v2 }
 0x8fb   : > { %4162 = vmatmul.mubr.msk.bf16.vlgmr.msra.gmra.mrb[8].mxu1 %vm1483_vm10, %v4424_v60 }
 0x8fc   : > { %4166 = vmatpush3.bf16.msra.mxu1 %v3396_v50  ;;  %4167 = vmatprep.mubr.msk.bf16.mxu1 %vm4443_vm0, %v4442_v0 }
 0x8fd   : > { %4171 = vmatprep.subr.bf16.mxu1 %v4442_v0 }
 0x902   : > { %3952 = vmatmul.mubr.msk.bf16.vlgmr.msra.gmra.mrb[8].mxu0 %vm1483_vm10, %v4425_v3 }
 0x903   : > { %3518 = vmatpush1.bf16.msra.mxu0 %v3509_v5  ;;  %3549 = vmatprep.mubr.bf16.mxu0 %v4826_v63 }
 0x907   : > { %4168 = vmatmul.mubr.msk.bf16.vlgmr.msra.gmra.mrb[8].mxu1 %vm1483_vm10, %v4425_v3 }
 0x908   : > { %4172 = vmatpush3.bf16.msra.mxu1 %v3508_v62  ;;  %4173 = vmatprep.mubr.msk.bf16.mxu1 %vm4443_vm0, %v4442_v0  ;;  %vm5081_vm0 = vcmask 257024  }
 0x909   : > { %vm5082_vm12 = vmmov %vm5081_vm0 }
 0x90e   : > { %3957 = vmatmul.mubr.msk.bf16.vlgmr.msra.gmra.mrb[8].mxu0 %vm1483_vm10, %v4426_v6 }
 0x913   : > { %4174 = vmatmul.mubr.msk.bf16.vlgmr.msra.gmra.mrb[8].mxu1 %vm1483_vm10, %v4426_v6 }
 0x9e1   : > { %v3551_v7 = vpop.f32.mrb[8].mxu0 }
 0x9e2   : > { %v3610_v8 = vrot.slane %v3551_v7, 4  ;;  %v3553_v9 = vpop.f32.mrb[9].mxu0 }
 0x9e3   : > { %v3611_v10 = vrot.slane %v3553_v9, 4  ;;  %v3555_v11 = vpop.f32.mrb[10].mxu0 }
 0x9e4   : > { %v3616_v63 = vadd.f32 %v3610_v8, %v3551_v7  ;;  %v3557_v12 = vpop.f32.mrb[11].mxu0  ;;  %v3625_v16 = vrot.slane %v3555_v11, 4 }
 0x9e5   : > { %v3617_v13 = vadd.f32 %v3611_v10, %v3553_v9  ;;  %v3626_v20 = vrot.slane %v3557_v12, 4 }
 0x9e6   : > { %v3594_v14 = vpop.f32.mrb[8].mxu1  ;;  %v3619_v15 = vadd.f32 %v3616_v63, %v3555_v11 }
 0x9e7   : > { %v3612_v17 = vrot.slane %v3594_v14, 4  ;;  %v4175_v18 = vpop.f32.mrb[9].mxu1  ;;  %v3620_v19 = vadd.f32 %v3617_v13, %v3557_v12 }
 0x9e8   : > { %v3631_v21 = vadd.f32 %v3625_v16, %v3619_v15  ;;  %v3597_v22 = vpop.f32.mrb[10].mxu1 }
 0x9e9   : > { %v3618_v23 = vadd.f32 %v3612_v17, %v3594_v14  ;;  %v3632_v24 = vadd.f32 %v3626_v20, %v3620_v19  ;;  %v4176_v25 = vpop.f32.mrb[11].mxu1  ;;  %v3627_v28 = vrot.slane %v3597_v22, 4 }
 0x9ea   : > { %v3634_v26 = vmul.f32 %v3631_v21, %v4637_v36 }
 0x9eb   : > { %v3621_v27 = vadd.f32 %v3618_v23, %v3597_v22  ;;  %v3635_v29 = vmul.f32 %v3632_v24, %v4639_v39 }
 0x9ec   : > { %v3637_v30 = vsel %vm260_vm1, %v3634_v26, 0.0 }
 0x9ed   : > { %v3633_v31 = vadd.f32 %v3627_v28, %v3621_v27  ;;  %v3638_v32 = vsel %vm260_vm1, %v3635_v29, 0.0 }
 0x9ee   : > { %v3639_v33 = vadd.f32 %v3638_v32, %v3637_v30 }
 0x9ef   : > { %v3636_v34 = vmul.f32 %v3633_v31, %v4641_v40 }
 0x9f1   : > { %v3640_v35 = vsel %vm5081_vm0, %v3636_v34, 0.0 }
 0x9f2   : > { %v3641_v37 = vadd.f32 %v3640_v35, %v3639_v33 }
 0x9f4   : > { %3642 = vadd.xlane.f32.xlu0 %v3641_v37 }
 0xa81   : > { %v3643_v38 = vpop.xlane.xlu0 %3642 }
 0xa82   : > { %v3644_v41 = vmul.f32 0.0009765625, %v3643_v38 }
 0xa84   : > { %v3646_v42 = vrot.slane %v3644_v41, 4 }
 0xa86   : > { %v3648_v43 = vsel %vm260_vm1, %v3644_v41, %v3646_v42 }
 0xa87   : > { %3651 = vperm.xlu1 %4395, %v3648_v43  }
 0xb06   : > { %v3652_v44 = vpop.permute.xlu1 %3651 }
 0xb07   : > { %v3654_v45 = vsub.f32 %v3551_v7, %v3652_v44  ;;  %v3655_v46 = vsub.f32 %v3553_v9, %v3652_v44  ;;  %v3656_v47 = vsub.f32 %v3594_v14, %v3652_v44  ;;  %v3657_v48 = vsub.f32 %v3555_v11, %v3652_v44 }
 0xb08   : > { %v3658_v49 = vsub.f32 %v3557_v12, %v3652_v44  ;;  %v3659_v50 = vsub.f32 %v3597_v22, %v3652_v44 }
 0xb09   : > { %v3660_v51 = vmul.f32 %v3654_v45, %v4637_v36  ;;  %v3661_v52 = vmul.f32 %v3655_v46, %v4639_v39  ;;  %v3662_v53 = vmul.f32 %v3656_v47, %v4641_v40  ;;  %v3663_v60 = vmul.f32 %v3657_v48, %v4637_v36 }
 0xb0a   : > { %v3664_v61 = vmul.f32 %v3658_v49, %v4639_v39  ;;  %v3665_v62 = vmul.f32 %v3659_v50, %v4641_v40 }
 0xb0b   : > { %v3666_v1 = vmul.f32 %v3660_v51, %v3660_v51  ;;  %v3667_v2 = vmul.f32 %v3661_v52, %v3661_v52  ;;  %v3668_v3 = vmul.f32 %v3662_v53, %v3662_v53  ;;  %v3669_v4 = vmul.f32 %v3663_v60, %v3663_v60 }
 0xb0c   : > { %v3670_v5 = vmul.f32 %v3664_v61, %v3664_v61  ;;  %v3671_v6 = vmul.f32 %v3665_v62, %v3665_v62 }
 0xb0d   : > { %v3675_v7 = vrot.slane %v3666_v1, 4  ;;  %v3676_v8 = vrot.slane %v3667_v2, 4  ;;  %v3677_v9 = vrot.slane %v3668_v3, 4  ;;  %v3690_v12 = vrot.slane %v3669_v4, 4 }
 0xb0e   : > { %v3691_v13 = vrot.slane %v3670_v5, 4  ;;  %v3692_v39 = vrot.slane %v3671_v6, 4 }
 0xb0f   : > { %v3681_v10 = vadd.f32 %v3675_v7, %v3666_v1  ;;  %v3682_v11 = vadd.f32 %v3676_v8, %v3667_v2  ;;  %v3683_v63 = vadd.f32 %v3677_v9, %v3668_v3 }
 0xb11   : > { %v3684_v14 = vadd.f32 %v3681_v10, %v3669_v4  ;;  %v3685_v36 = vadd.f32 %v3682_v11, %v3670_v5  ;;  %v3686_v15 = vadd.f32 %v3683_v63, %v3671_v6 }
 0xb13   : > { %v3696_v16 = vadd.f32 %v3690_v12, %v3684_v14  ;;  %v3697_v40 = vadd.f32 %v3691_v13, %v3685_v36  ;;  %v3698_v17 = vadd.f32 %v3692_v39, %v3686_v15 }
 0xb15   : > { %v3699_v18 = vsel %vm260_vm1, %v3696_v16, 0.0  ;;  %v3700_v19 = vsel %vm260_vm1, %v3697_v40, 0.0  ;;  %v3702_v21 = vsel %vm5082_vm12, %v3698_v17, 0.0 }
 0xb16   : > { %v3701_v20 = vadd.f32 %v3700_v19, %v3699_v18 }
 0xb18   : > { %v3703_v22 = vadd.f32 %v3702_v21, %v3701_v20 }
 0xb1a   : > { %3704 = vadd.xlane.f32.xlu1 %v3703_v22 }
 0xba7   : > { %v3705_v23 = vpop.xlane.xlu1 %3704 }
 0xba8   : > { %v3706_v24 = vmul.f32 0.0009765625, %v3705_v23 }
 0xbaa   : > { %v3707_v25 = vadd.f32 1e-05, %v3706_v24 }
 0xbac   : > { %4431 = vrsqrt.f32 %v3707_v25 }
 0xbb6   : > { %v4432_v26 = vpop.eup %4431 }
 0xbb7   : > { %v3710_v27 = vrot.slane %v4432_v26, 4 }
 0xbb9   : > { %v3712_v28 = vsel %vm260_vm1, %v4432_v26, %v3710_v27 }
 0xbba   : > { %3715 = vperm.xlu0 %4396, %v3712_v28  }
 0xc39   : > { %v3716_v29 = vpop.permute.xlu0 %3715 }
 0xc3a   : > { %v3718_v30 = vmul.f32 %v3716_v29, %v3660_v51  ;;  %v3719_v31 = vmul.f32 %v3716_v29, %v3661_v52  ;;  %v3720_v32 = vmul.f32 %v3716_v29, %v3662_v53  ;;  %v3721_v33 = vmul.f32 %v3716_v29, %v3663_v60 }
 0xc3b   : > { %v3722_v34 = vmul.f32 %v3716_v29, %v3664_v61  ;;  %v3723_v35 = vmul.f32 %v3716_v29, %v3665_v62 }
 0xc3c   : > { %v3724_v37 = vadd.f32 %v3718_v30, %v4668_v54  ;;  %v3725_v38 = vadd.f32 %v3719_v31, %v4670_v55  ;;  %v3726_v41 = vadd.f32 %v3720_v32, %v4672_v56  ;;  %v3727_v42 = vadd.f32 %v3721_v33, %v4674_v57 }
 0xc3d   : > { %v3728_v43 = vadd.f32 %v3722_v34, %v4676_v58  ;;  %v3729_v44 = vadd.f32 %v3723_v35, %v4678_v59 }
 0xc3e   : > { %vm3730_vm1 = vcmp.ge.f32.partialorder %v3724_v37, 0.0  ;;  %vm3731_vm9 = vcmp.ge.f32.partialorder %v3725_v38, 0.0  ;;  %vm3732_vm10 = vcmp.ge.f32.partialorder %v3726_v41, 0.0  ;;  %vm3733_vm13 = vcmp.ge.f32.partialorder %v3727_v42, 0.0 }
 0xc3f   : > { %vm3734_vm14 = vcmp.ge.f32.partialorder %v3728_v43, 0.0  ;;  %vm3735_vm15 = vcmp.ge.f32.partialorder %v3729_v44, 0.0  ;;  %v3736_v54 = vmul.f32 0.01, %v3724_v37  ;;  %v3737_v55 = vmul.f32 0.01, %v3725_v38 }
 0xc40   : > { %v3738_v45 = vmul.f32 0.01, %v3726_v41  ;;  %v3739_v56 = vmul.f32 0.01, %v3727_v42  ;;  %v3740_v46 = vmul.f32 0.01, %v3728_v43 }
 0xc41   : > { %v3741_v57 = vmul.f32 0.01, %v3729_v44  ;;  %v3742_v47 = vsel %vm3730_vm1, %v3724_v37, %v3736_v54  ;;  %v3743_v58 = vsel %vm3731_vm9, %v3725_v38, %v3737_v55 }
 0xc42   : > { %v3744_v48 = vsel %vm3732_vm10, %v3726_v41, %v3738_v45  ;;  %v3745_v59 = vsel %vm3733_vm13, %v3727_v42, %v3739_v56  ;;  %v3746_v49 = vsel %vm3734_vm14, %v3728_v43, %v3740_v46  ;;  %3748 = vst [vmem:[%s224_s12] sm:$0xff] %v3742_v47  ;;  %3749 = vst [vmem:[%s224_s12 + $0x8] sm:$0xff] %v3743_v58 }
 0xc43   : > { %v3747_v50 = vsel %vm3735_vm15, %v3729_v44, %v3741_v57  ;;  %3750 = vst.msk [vmem:[%s224_s12 + $0x10] sm:$0xff] %vm1448_vm8, %v3744_v48  ;;  %3751 = vst [vmem:[%s224_s12 + $0x18] sm:$0xff] %v3745_v59 }
 0xc44   : > { %3752 = vst [vmem:[%s224_s12 + $0x20] sm:$0xff] %v3746_v49  ;;  %3753 = vst.msk [vmem:[%s224_s12 + $0x28] sm:$0xff] %vm1448_vm8, %v3747_v50 }
 0xc45   : > { %3754 = vst.msk [vmem:[%s224_s12 + $0x10] sm:$0xff] %vm5083_vm2, %v4442_v0 }
 0xc46   : > { %3755 = vst.msk [vmem:[%s224_s12 + $0x28] sm:$0xff] %vm5084_vm4, %v4442_v0 }
 0xc47 PF: > { %s15_s18 = sadd.s32 1, %s4440_s18  }
 0xc48   : > { %p12_p4 = scmp.ge.s32.totalorder %s15_s18, 4  }
 0xc4a   :  { %14 = sbr.rel (!%p12_p4) target bundleno = 1 (0x1), region = 94 }

</bundles_post_ra>
